<compile_context>
chip_gen: v7x
topology: tpu7x:2x2x1
jax: 0.10.0
libtpu: 0.0.40
codegen_flags: <defaults>
</compile_context>

<pallas_src>
import functools

import numpy as np

import jax
import jax.numpy as jnp
from jax.experimental import pallas as pl
from jax.experimental.pallas import tpu as pltpu


# ----------------------------------------------------------------------------- fused kernel

def _up_block_kernel(hid_ref, res_ref, tproj_ref,
                     gm1_ref, g1_ref, b1_ref, w1_ref, cb1_ref,
                     gm2_ref, g2_ref, b2_ref, w2_ref, cb2_ref,
                     skw_ref, skb_ref, wp_ref, pb_ref,
                     spre_ref, spost_ref,
                     o_ref, *, eps, inv_cnt1, inv_cnt2):
    """One batch element per grid step.  All activations are (channels, flat_spatial)."""
    f32 = jnp.float32

    def gn_silu(x, gmat, gamma, beta, inv_cnt):
        # GroupNorm (two-pass variance) + SiLU.  gmat[i, j] = 1 iff channels i, j share a group.
        gx = jnp.dot(gmat, x, preferred_element_type=f32)            # per-channel group field
        mean = jnp.sum(gx, axis=1, keepdims=True) * inv_cnt          # (C, 1) group mean
        xc = x - mean
        gxx = jnp.dot(gmat, xc * xc, preferred_element_type=f32)
        var = jnp.sum(gxx, axis=1, keepdims=True) * inv_cnt          # (C, 1) group variance
        y = xc * jax.lax.rsqrt(var + eps) * gamma + beta
        return y * jax.nn.sigmoid(y)                                 # SiLU

    def conv3x3(x, w_row, bias, shift_ref):
        # x: (Cin, P); shift_ref: (9, P, Q); w_row: (Cout, 9*Cin); returns (Cout, Q).
        # Shift matrices implement "pad-then-shift" (and, for the post conv, also the
        # nearest-2x upsample).  im2col rows are ordered (tap, in-channel), tap = 3*dy + dx.
        cols = [jnp.dot(x, shift_ref[t], preferred_element_type=f32) for t in range(9)]
        im2col = jnp.concatenate(cols, axis=0)                       # (9*Cin, Q)
        return jnp.dot(w_row, im2col, preferred_element_type=f32) + bias

    # torch.cat([hidden_states, res_hidden_states], dim=1) -> sublane concat of (C, HW) tiles
    x_cat = jnp.concatenate([hid_ref[0], res_ref[0]], axis=0).astype(f32)     # (C_cat, HW)

    # --- DiffusionUNetResnetBlock ---
    h = gn_silu(x_cat, gm1_ref[...], g1_ref[...], b1_ref[...], inv_cnt1)
    h = conv3x3(h, w1_ref[...], cb1_ref[...], spre_ref)                       # conv1
    h = h + tproj_ref[0]                                                      # + temb proj
    h = gn_silu(h, gm2_ref[...], g2_ref[...], b2_ref[...], inv_cnt2)
    h = conv3x3(h, w2_ref[...], cb2_ref[...], spre_ref)                       # conv2
    res_out = jnp.dot(skw_ref[...], x_cat, preferred_element_type=f32) \
        + skb_ref[...] + h                                                    # skip(x) + h

    # --- WrappedUpsample: nearest-2x upsample fused into the post 3x3 conv ---
    y = conv3x3(res_out, wp_ref[...], pb_ref[...], spost_ref)                 # (C_out, 4*HW)
    o_ref[0] = y.astype(o_ref.dtype)


# ----------------------------------------------------------------------------- constant builders

def _make_shift_mats(H, W):
    """S[t, q, p] = 1 iff output pixel p's tap t reads input pixel q (zero padding -> 0 row)."""
    HW = H * W
    m = np.zeros((9, HW, HW), np.float32)
    for dy in range(3):
        for dx in range(3):
            t = dy * 3 + dx
            for y in range(H):
                sy = y + dy - 1
                if not 0 <= sy < H:
                    continue
                for x in range(W):
                    sx = x + dx - 1
                    if 0 <= sx < W:
                        m[t, sy * W + sx, y * W + x] = 1.0
    return m


def _make_upsample_shift_mats(H, W):
    """Same as above but composed with nearest-2x upsample: low-res pixel q feeds tap t of
    high-res output pixel p (p indexes the (2H, 2W) grid)."""
    H2, W2 = 2 * H, 2 * W
    m = np.zeros((9, H * W, H2 * W2), np.float32)
    for dy in range(3):
        for dx in range(3):
            t = dy * 3 + dx
            for yo in range(H2):
                sy = yo + dy - 1
                if not 0 <= sy < H2:
                    continue
                for xo in range(W2):
                    sx = xo + dx - 1
                    if 0 <= sx < W2:
                        m[t, (sy // 2) * W + (sx // 2), yo * W2 + xo] = 1.0
    return m


def _group_mate_matrix(C, groups):
    cpg = C // groups
    idx = np.arange(C)
    return (idx[:, None] // cpg == idx[None, :] // cpg).astype(np.float32)


# ----------------------------------------------------------------------------- forward wrapper

def up_block_forward(params, hidden_nchw, res_nchw, temb, *, groups, eps):
    """Matches UpBlock.forward with num_res_blocks=1, add_upsample=True, resblock_updown=False."""
    N, C_prev, H, W = hidden_nchw.shape
    C_in = res_nchw.shape[1]
    C_cat = C_prev + C_in
    C_out = params["conv1_b"].shape[0]
    HW = H * W
    HWo = 4 * HW

    # NCHW -> (N, C, H*W): free, row-major-contiguous reshapes (no transpose needed)
    hid = hidden_nchw.reshape(N, C_prev, HW)
    res = res_nchw.reshape(N, C_in, HW)

    # time_emb_proj(SiLU(temb)): a (N,T)@(T,C_out) matmul -- far below pallas_call overhead,
    # computed with plain jnp per the perf review and fed to the fused kernel as a column.
    t = temb * jax.nn.sigmoid(temb)
    tproj = (t @ params["temb_w"] + params["temb_b"]).reshape(N, C_out, 1)

    col = lambda v: v.reshape(-1, 1)
    row_w = lambda w: jnp.transpose(w, (3, 0, 1, 2)).reshape(w.shape[3], 9 * w.shape[2])

    # hoisted constants (built once at trace time on the host)
    gm1 = jnp.asarray(_group_mate_matrix(C_cat, groups))
    gm2 = jnp.asarray(_group_mate_matrix(C_out, groups))
    s_pre = jnp.asarray(_make_shift_mats(H, W))               # (9, HW, HW)
    s_post = jnp.asarray(_make_upsample_shift_mats(H, W))     # (9, HW, 4*HW)

    kern = functools.partial(
        _up_block_kernel, eps=eps,
        inv_cnt1=1.0 / (HW * (C_cat // groups)),
        inv_cnt2=1.0 / (HW * (C_out // groups)))

    const = lambda shape: pl.BlockSpec(shape, lambda n: (0,) * len(shape))

    out_flat = pl.pallas_call(
        kern,
        out_shape=jax.ShapeDtypeStruct((N, C_out, HWo), hidden_nchw.dtype),
        grid=(N,),
        in_specs=[
            pl.BlockSpec((1, C_prev, HW), lambda n: (n, 0, 0)),
            pl.BlockSpec((1, C_in, HW), lambda n: (n, 0, 0)),
            pl.BlockSpec((1, C_out, 1), lambda n: (n, 0, 0)),
            const((C_cat, C_cat)),          # gm1
            const((C_cat, 1)),              # norm1 gamma
            const((C_cat, 1)),              # norm1 beta
            const((C_out, 9 * C_cat)),      # conv1 weight (row form)
            const((C_out, 1)),              # conv1 bias
            const((C_out, C_out)),          # gm2
            const((C_out, 1)),              # norm2 gamma
            const((C_out, 1)),              # norm2 beta
            const((C_out, 9 * C_out)),      # conv2 weight
            const((C_out, 1)),              # conv2 bias
            const((C_out, C_cat)),          # skip 1x1 weight (transposed)
            const((C_out, 1)),              # skip bias
            const((C_out, 9 * C_out)),      # post conv weight
            const((C_out, 1)),              # post conv bias
            const((9, HW, HW)),             # shift matrices (pre-upsample resolution)
            const((9, HW, HWo)),            # upsample-fused shift matrices
        ],
        out_specs=pl.BlockSpec((1, C_out, HWo), lambda n: (n, 0, 0)),
        compiler_params=pltpu.CompilerParams(dimension_semantics=("parallel",)),
    )(
        hid, res, tproj,
        gm1, col(params["norm1_g"]), col(params["norm1_b"]),
        row_w(params["conv1_w"]), col(params["conv1_b"]),
        gm2, col(params["norm2_g"]), col(params["norm2_b"]),
        row_w(params["conv2_w"]), col(params["conv2_b"]),
        jnp.transpose(params["skip_w"]), col(params["skip_b"]),
        row_w(params["post_w"]), col(params["post_b"]),
        s_pre, s_post,
    )

    # (N, C_out, 4*H*W) -> NCHW output (contiguous reshape, no transpose)
    return out_flat.reshape(N, C_out, 2 * H, 2 * W)


# ----------------------------------------------------------------------------- pure-JAX reference

def _ref_groupnorm(x, gamma, beta, groups, eps):
    N, H, W, C = x.shape
    xg = x.reshape(N, H, W, groups, C // groups)
    mean = xg.mean(axis=(1, 2, 4), keepdims=True)
    var = ((xg - mean) ** 2).mean(axis=(1, 2, 4), keepdims=True)
    xn = ((xg - mean) / jnp.sqrt(var + eps)).reshape(N, H, W, C)
    return xn * gamma + beta


def _ref_conv3x3(x, w, b):
    y = jax.lax.conv_general_dilated(
        x, w, (1, 1), "SAME", dimension_numbers=("NHWC", "HWIO", "NHWC"),
        precision=jax.lax.Precision.HIGHEST)
    return y + b


def _silu(x):
    return x * jax.nn.sigmoid(x)


def ref_forward(params, hidden_states_nchw, res_hidden_nchw, temb, *, groups, eps):
    x = jnp.transpose(hidden_states_nchw, (0, 2, 3, 1))
    res = jnp.transpose(res_hidden_nchw, (0, 2, 3, 1))
    x = jnp.concatenate([x, res], axis=-1)
    h = _silu(_ref_groupnorm(x, params["norm1_g"], params["norm1_b"], groups, eps))
    tproj = _silu(temb) @ params["temb_w"] + params["temb_b"]
    h = _ref_conv3x3(h, params["conv1_w"], params["conv1_b"]) + tproj[:, None, None, :]
    h = _silu(_ref_groupnorm(h, params["norm2_g"], params["norm2_b"], groups, eps))
    h = _ref_conv3x3(h, params["conv2_w"], params["conv2_b"])
    skip = jnp.einsum("nhwc,cd->nhwd", x, params["skip_w"],
                      precision=jax.lax.Precision.HIGHEST) + params["skip_b"]
    x = skip + h
    x = jnp.repeat(jnp.repeat(x, 2, axis=1), 2, axis=2)
    x = _ref_conv3x3(x, params["post_w"], params["post_b"])
    return jnp.transpose(x, (0, 3, 1, 2))


# ----------------------------------------------------------------------------- main

if __name__ == "__main__":
    # Module config (small, consistent with UpBlock __init__):
    #   spatial_dims=2, in_channels=4, prev_output_channel=4, out_channels=4,
    #   temb_channels=8, num_res_blocks=1, norm_num_groups=2, norm_eps=1e-6,
    #   add_upsample=True, resblock_updown=False
    N, C_in, C_prev, C_out, T = 2, 4, 4, 4, 8
    H = W = 8
    GROUPS, EPS = 2, 1e-6
    C_cat = C_prev + C_in  # resnet input channels = 8

    key = jax.random.PRNGKey(0)
    ks = jax.random.split(key, 16)
    f32 = jnp.float32

    params = {
        "norm1_g": 1.0 + 0.1 * jax.random.normal(ks[0], (C_cat,), f32),
        "norm1_b": 0.1 * jax.random.normal(ks[1], (C_cat,), f32),
        "conv1_w": 0.15 * jax.random.normal(ks[2], (3, 3, C_cat, C_out), f32),   # HWIO
        "conv1_b": 0.05 * jax.random.normal(ks[3], (C_out,), f32),
        "temb_w": 0.15 * jax.random.normal(ks[4], (T, C_out), f32),
        "temb_b": 0.05 * jax.random.normal(ks[5], (C_out,), f32),
        "norm2_g": 1.0 + 0.1 * jax.random.normal(ks[6], (C_out,), f32),
        "norm2_b": 0.1 * jax.random.normal(ks[7], (C_out,), f32),
        "conv2_w": 0.15 * jax.random.normal(ks[8], (3, 3, C_out, C_out), f32),
        "conv2_b": 0.05 * jax.random.normal(ks[9], (C_out,), f32),
        "skip_w": 0.15 * jax.random.normal(ks[10], (C_cat, C_out), f32),
        "skip_b": 0.05 * jax.random.normal(ks[11], (C_out,), f32),
        "post_w": 0.15 * jax.random.normal(ks[12], (3, 3, C_out, C_out), f32),
        "post_b": 0.05 * jax.random.normal(ks[13], (C_out,), f32),
    }

    hidden_states = jax.random.normal(ks[14], (N, C_prev, H, W), f32)   # NCHW, like PyTorch
    res_hidden = jax.random.normal(ks[15], (N, C_in, H, W), f32)        # NCHW
    temb = jax.random.normal(jax.random.fold_in(key, 99), (N, T), f32)

    fwd = jax.jit(functools.partial(up_block_forward, groups=GROUPS, eps=EPS))
    out = jax.block_until_ready(fwd(params, hidden_states, res_hidden, temb))

    assert out.shape == (N, C_out, 2 * H, 2 * W), out.shape

    ref = ref_forward(params, hidden_states, res_hidden, temb, groups=GROUPS, eps=EPS)
    err = float(jnp.max(jnp.abs(out - ref)))
    # tightened from 1e-2; headroom only for MXU bf16-pass rounding of f32 matmuls
    assert err < 5e-3, f"max abs error too large: {err}"

    print("KERNEL_OK")
</pallas_src>

<mosaic_0001>
module attributes {stable_mosaic.version = 11 : i64} {
  func.func @_up_block_kernel(%arg0: i32, %arg1: memref<1x4x64xf32, #tpu.memory_space<vmem>>, %arg2: memref<1x4x64xf32, #tpu.memory_space<vmem>>, %arg3: memref<1x4x1xf32, #tpu.memory_space<vmem>>, %arg4: memref<8x8xf32, #tpu.memory_space<vmem>>, %arg5: memref<8x1xf32, #tpu.memory_space<vmem>>, %arg6: memref<8x1xf32, #tpu.memory_space<vmem>>, %arg7: memref<4x72xf32, #tpu.memory_space<vmem>>, %arg8: memref<4x1xf32, #tpu.memory_space<vmem>>, %arg9: memref<4x4xf32, #tpu.memory_space<vmem>>, %arg10: memref<4x1xf32, #tpu.memory_space<vmem>>, %arg11: memref<4x1xf32, #tpu.memory_space<vmem>>, %arg12: memref<4x36xf32, #tpu.memory_space<vmem>>, %arg13: memref<4x1xf32, #tpu.memory_space<vmem>>, %arg14: memref<4x8xf32, #tpu.memory_space<vmem>>, %arg15: memref<4x1xf32, #tpu.memory_space<vmem>>, %arg16: memref<4x36xf32, #tpu.memory_space<vmem>>, %arg17: memref<4x1xf32, #tpu.memory_space<vmem>>, %arg18: memref<9x64x64xf32, #tpu.memory_space<vmem>>, %arg19: memref<9x64x256xf32, #tpu.memory_space<vmem>>, %arg20: memref<1x4x256xf32, #tpu.memory_space<vmem>>) attributes {dimension_semantics = [#tpu.dimension_semantics<parallel>], iteration_bounds = array<i64: 2>, scalar_prefetch = 0 : i64, scratch_operands = 0 : i64, tpu.core_type = #tpu.core_type<tc>, window_params = [{transform_indices = @transform_0, window_bounds = array<i64: 1, 4, 64>}, {transform_indices = @transform_1, window_bounds = array<i64: 1, 4, 64>}, {transform_indices = @transform_2, window_bounds = array<i64: 1, 4, 1>}, {pipeline_mode = #tpu.pipeline_mode<synchronous>, transform_indices = @transform_3, window_bounds = array<i64: 8, 8>}, {pipeline_mode = #tpu.pipeline_mode<synchronous>, transform_indices = @transform_4, window_bounds = array<i64: 8, 1>}, {pipeline_mode = #tpu.pipeline_mode<synchronous>, transform_indices = @transform_5, window_bounds = array<i64: 8, 1>}, {pipeline_mode = #tpu.pipeline_mode<synchronous>, transform_indices = @transform_6, window_bounds = array<i64: 4, 72>}, {pipeline_mode = #tpu.pipeline_mode<synchronous>, transform_indices = @transform_7, window_bounds = array<i64: 4, 1>}, {pipeline_mode = #tpu.pipeline_mode<synchronous>, transform_indices = @transform_8, window_bounds = array<i64: 4, 4>}, {pipeline_mode = #tpu.pipeline_mode<synchronous>, transform_indices = @transform_9, window_bounds = array<i64: 4, 1>}, {pipeline_mode = #tpu.pipeline_mode<synchronous>, transform_indices = @transform_10, window_bounds = array<i64: 4, 1>}, {pipeline_mode = #tpu.pipeline_mode<synchronous>, transform_indices = @transform_11, window_bounds = array<i64: 4, 36>}, {pipeline_mode = #tpu.pipeline_mode<synchronous>, transform_indices = @transform_12, window_bounds = array<i64: 4, 1>}, {pipeline_mode = #tpu.pipeline_mode<synchronous>, transform_indices = @transform_13, window_bounds = array<i64: 4, 8>}, {pipeline_mode = #tpu.pipeline_mode<synchronous>, transform_indices = @transform_14, window_bounds = array<i64: 4, 1>}, {pipeline_mode = #tpu.pipeline_mode<synchronous>, transform_indices = @transform_15, window_bounds = array<i64: 4, 36>}, {pipeline_mode = #tpu.pipeline_mode<synchronous>, transform_indices = @transform_16, window_bounds = array<i64: 4, 1>}, {pipeline_mode = #tpu.pipeline_mode<synchronous>, transform_indices = @transform_17, window_bounds = array<i64: 9, 64, 64>}, {pipeline_mode = #tpu.pipeline_mode<synchronous>, transform_indices = @transform_18, window_bounds = array<i64: 9, 64, 256>}, {transform_indices = @transform_19, window_bounds = array<i64: 1, 4, 256>}]} {
    %c0 = arith.constant 0 : index
    %c0_0 = arith.constant 0 : index
    %c0_1 = arith.constant 0 : index
    %0 = vector.load %arg1[%c0, %c0_0, %c0_1] : memref<1x4x64xf32, #tpu.memory_space<vmem>>, vector<1x4x64xf32>
    %1 = vector.shape_cast %0 : vector<1x4x64xf32> to vector<4x64xf32>
    %c0_2 = arith.constant 0 : index
    %c0_3 = arith.constant 0 : index
    %c0_4 = arith.constant 0 : index
    %2 = vector.load %arg2[%c0_2, %c0_3, %c0_4] : memref<1x4x64xf32, #tpu.memory_space<vmem>>, vector<1x4x64xf32>
    %3 = vector.shape_cast %2 : vector<1x4x64xf32> to vector<4x64xf32>
    %4 = tpu.concatenate %1, %3 in 0 : vector<4x64xf32>, vector<4x64xf32> -> vector<8x64xf32>
    %c0_5 = arith.constant 0 : index
    %c0_6 = arith.constant 0 : index
    %5 = vector.load %arg4[%c0_5, %c0_6] : memref<8x8xf32, #tpu.memory_space<vmem>>, vector<8x8xf32>
    %c0_7 = arith.constant 0 : index
    %c0_8 = arith.constant 0 : index
    %6 = vector.load %arg5[%c0_7, %c0_8] : memref<8x1xf32, #tpu.memory_space<vmem>>, vector<8x1xf32>
    %c0_9 = arith.constant 0 : index
    %c0_10 = arith.constant 0 : index
    %7 = vector.load %arg6[%c0_9, %c0_10] : memref<8x1xf32, #tpu.memory_space<vmem>>, vector<8x1xf32>
    %cst = arith.constant dense<0.000000e+00> : vector<8x64xf32>
    %8 = tpu.matmul %5, %4, %cst {dimension_numbers = #tpu.dot_dimension_numbers<[1], [0], [0], [1], [0, 0, 1, 1], [], []>} : vector<8x8xf32>, vector<8x64xf32>, vector<8x64xf32> -> vector<8x64xf32>
    %cst_11 = arith.constant dense<0.000000e+00> : vector<8xf32>
    %9 = vector.multi_reduction <add>, %8, %cst_11 [1] : vector<8x64xf32> to vector<8xf32>
    %10 = vector.shape_cast %9 : vector<8xf32> to vector<8x1xf32>
    %cst_12 = arith.constant 3.906250e-03 : f32
    %11 = vector.broadcast %cst_12 : f32 to vector<8x1xf32>
    %12 = arith.mulf %10, %11 : vector<8x1xf32>
    %13 = vector.broadcast %12 : vector<8x1xf32> to vector<8x64xf32>
    %14 = arith.subf %4, %13 : vector<8x64xf32>
    %15 = arith.mulf %14, %14 : vector<8x64xf32>
    %cst_13 = arith.constant dense<0.000000e+00> : vector<8x64xf32>
    %16 = tpu.matmul %5, %15, %cst_13 {dimension_numbers = #tpu.dot_dimension_numbers<[1], [0], [0], [1], [0, 0, 1, 1], [], []>} : vector<8x8xf32>, vector<8x64xf32>, vector<8x64xf32> -> vector<8x64xf32>
    %cst_14 = arith.constant dense<0.000000e+00> : vector<8xf32>
    %17 = vector.multi_reduction <add>, %16, %cst_14 [1] : vector<8x64xf32> to vector<8xf32>
    %18 = vector.shape_cast %17 : vector<8xf32> to vector<8x1xf32>
    %cst_15 = arith.constant 3.906250e-03 : f32
    %19 = vector.broadcast %cst_15 : f32 to vector<8x1xf32>
    %20 = arith.mulf %18, %19 : vector<8x1xf32>
    %cst_16 = arith.constant 9.99999997E-7 : f32
    %21 = vector.broadcast %cst_16 : f32 to vector<8x1xf32>
    %22 = arith.addf %20, %21 : vector<8x1xf32>
    %23 = math.rsqrt %22 : vector<8x1xf32>
    %24 = vector.broadcast %23 : vector<8x1xf32> to vector<8x64xf32>
    %25 = arith.mulf %14, %24 : vector<8x64xf32>
    %26 = vector.broadcast %6 : vector<8x1xf32> to vector<8x64xf32>
    %27 = arith.mulf %25, %26 : vector<8x64xf32>
    %28 = vector.broadcast %7 : vector<8x1xf32> to vector<8x64xf32>
    %29 = arith.addf %27, %28 : vector<8x64xf32>
    %30 = arith.negf %29 : vector<8x64xf32>
    %31 = math.exp %30 : vector<8x64xf32>
    %cst_17 = arith.constant 1.000000e+00 : f32
    %32 = vector.broadcast %cst_17 : f32 to vector<8x64xf32>
    %33 = arith.addf %32, %31 : vector<8x64xf32>
    %34 = arith.divf %32, %33 : vector<8x64xf32>
    %35 = arith.mulf %29, %34 : vector<8x64xf32>
    %c0_18 = arith.constant 0 : index
    %c0_19 = arith.constant 0 : index
    %36 = vector.load %arg7[%c0_18, %c0_19] : memref<4x72xf32, #tpu.memory_space<vmem>>, vector<4x72xf32>
    %c0_20 = arith.constant 0 : index
    %c0_21 = arith.constant 0 : index
    %37 = vector.load %arg8[%c0_20, %c0_21] : memref<4x1xf32, #tpu.memory_space<vmem>>, vector<4x1xf32>
    %c0_22 = arith.constant 0 : index
    %c0_23 = arith.constant 0 : index
    %c0_24 = arith.constant 0 : index
    %38 = vector.load %arg18[%c0_22, %c0_23, %c0_24] : memref<9x64x64xf32, #tpu.memory_space<vmem>>, vector<1x64x64xf32>
    %39 = vector.shape_cast %38 : vector<1x64x64xf32> to vector<64x64xf32>
    %cst_25 = arith.constant dense<0.000000e+00> : vector<8x64xf32>
    %40 = tpu.matmul %35, %39, %cst_25 {dimension_numbers = #tpu.dot_dimension_numbers<[1], [0], [0], [1], [0, 0, 1, 1], [], []>} : vector<8x64xf32>, vector<64x64xf32>, vector<8x64xf32> -> vector<8x64xf32>
    %c1 = arith.constant 1 : index
    %c0_26 = arith.constant 0 : index
    %c0_27 = arith.constant 0 : index
    %41 = vector.load %arg18[%c1, %c0_26, %c0_27] : memref<9x64x64xf32, #tpu.memory_space<vmem>>, vector<1x64x64xf32>
    %42 = vector.shape_cast %41 : vector<1x64x64xf32> to vector<64x64xf32>
    %cst_28 = arith.constant dense<0.000000e+00> : vector<8x64xf32>
    %43 = tpu.matmul %35, %42, %cst_28 {dimension_numbers = #tpu.dot_dimension_numbers<[1], [0], [0], [1], [0, 0, 1, 1], [], []>} : vector<8x64xf32>, vector<64x64xf32>, vector<8x64xf32> -> vector<8x64xf32>
    %c2 = arith.constant 2 : index
    %c0_29 = arith.constant 0 : index
    %c0_30 = arith.constant 0 : index
    %44 = vector.load %arg18[%c2, %c0_29, %c0_30] : memref<9x64x64xf32, #tpu.memory_space<vmem>>, vector<1x64x64xf32>
    %45 = vector.shape_cast %44 : vector<1x64x64xf32> to vector<64x64xf32>
    %cst_31 = arith.constant dense<0.000000e+00> : vector<8x64xf32>
    %46 = tpu.matmul %35, %45, %cst_31 {dimension_numbers = #tpu.dot_dimension_numbers<[1], [0], [0], [1], [0, 0, 1, 1], [], []>} : vector<8x64xf32>, vector<64x64xf32>, vector<8x64xf32> -> vector<8x64xf32>
    %c3 = arith.constant 3 : index
    %c0_32 = arith.constant 0 : index
    %c0_33 = arith.constant 0 : index
    %47 = vector.load %arg18[%c3, %c0_32, %c0_33] : memref<9x64x64xf32, #tpu.memory_space<vmem>>, vector<1x64x64xf32>
    %48 = vector.shape_cast %47 : vector<1x64x64xf32> to vector<64x64xf32>
    %cst_34 = arith.constant dense<0.000000e+00> : vector<8x64xf32>
    %49 = tpu.matmul %35, %48, %cst_34 {dimension_numbers = #tpu.dot_dimension_numbers<[1], [0], [0], [1], [0, 0, 1, 1], [], []>} : vector<8x64xf32>, vector<64x64xf32>, vector<8x64xf32> -> vector<8x64xf32>
    %c4 = arith.constant 4 : index
    %c0_35 = arith.constant 0 : index
    %c0_36 = arith.constant 0 : index
    %50 = vector.load %arg18[%c4, %c0_35, %c0_36] : memref<9x64x64xf32, #tpu.memory_space<vmem>>, vector<1x64x64xf32>
    %51 = vector.shape_cast %50 : vector<1x64x64xf32> to vector<64x64xf32>
    %cst_37 = arith.constant dense<0.000000e+00> : vector<8x64xf32>
    %52 = tpu.matmul %35, %51, %cst_37 {dimension_numbers = #tpu.dot_dimension_numbers<[1], [0], [0], [1], [0, 0, 1, 1], [], []>} : vector<8x64xf32>, vector<64x64xf32>, vector<8x64xf32> -> vector<8x64xf32>
    %c5 = arith.constant 5 : index
    %c0_38 = arith.constant 0 : index
    %c0_39 = arith.constant 0 : index
    %53 = vector.load %arg18[%c5, %c0_38, %c0_39] : memref<9x64x64xf32, #tpu.memory_space<vmem>>, vector<1x64x64xf32>
    %54 = vector.shape_cast %53 : vector<1x64x64xf32> to vector<64x64xf32>
    %cst_40 = arith.constant dense<0.000000e+00> : vector<8x64xf32>
    %55 = tpu.matmul %35, %54, %cst_40 {dimension_numbers = #tpu.dot_dimension_numbers<[1], [0], [0], [1], [0, 0, 1, 1], [], []>} : vector<8x64xf32>, vector<64x64xf32>, vector<8x64xf32> -> vector<8x64xf32>
    %c6 = arith.constant 6 : index
    %c0_41 = arith.constant 0 : index
    %c0_42 = arith.constant 0 : index
    %56 = vector.load %arg18[%c6, %c0_41, %c0_42] : memref<9x64x64xf32, #tpu.memory_space<vmem>>, vector<1x64x64xf32>
    %57 = vector.shape_cast %56 : vector<1x64x64xf32> to vector<64x64xf32>
    %cst_43 = arith.constant dense<0.000000e+00> : vector<8x64xf32>
    %58 = tpu.matmul %35, %57, %cst_43 {dimension_numbers = #tpu.dot_dimension_numbers<[1], [0], [0], [1], [0, 0, 1, 1], [], []>} : vector<8x64xf32>, vector<64x64xf32>, vector<8x64xf32> -> vector<8x64xf32>
    %c7 = arith.constant 7 : index
    %c0_44 = arith.constant 0 : index
    %c0_45 = arith.constant 0 : index
    %59 = vector.load %arg18[%c7, %c0_44, %c0_45] : memref<9x64x64xf32, #tpu.memory_space<vmem>>, vector<1x64x64xf32>
    %60 = vector.shape_cast %59 : vector<1x64x64xf32> to vector<64x64xf32>
    %cst_46 = arith.constant dense<0.000000e+00> : vector<8x64xf32>
    %61 = tpu.matmul %35, %60, %cst_46 {dimension_numbers = #tpu.dot_dimension_numbers<[1], [0], [0], [1], [0, 0, 1, 1], [], []>} : vector<8x64xf32>, vector<64x64xf32>, vector<8x64xf32> -> vector<8x64xf32>
    %c8 = arith.constant 8 : index
    %c0_47 = arith.constant 0 : index
    %c0_48 = arith.constant 0 : index
    %62 = vector.load %arg18[%c8, %c0_47, %c0_48] : memref<9x64x64xf32, #tpu.memory_space<vmem>>, vector<1x64x64xf32>
    %63 = vector.shape_cast %62 : vector<1x64x64xf32> to vector<64x64xf32>
    %cst_49 = arith.constant dense<0.000000e+00> : vector<8x64xf32>
    %64 = tpu.matmul %35, %63, %cst_49 {dimension_numbers = #tpu.dot_dimension_numbers<[1], [0], [0], [1], [0, 0, 1, 1], [], []>} : vector<8x64xf32>, vector<64x64xf32>, vector<8x64xf32> -> vector<8x64xf32>
    %65 = tpu.concatenate %40, %43, %46, %49, %52, %55, %58, %61, %64 in 0 : vector<8x64xf32>, vector<8x64xf32>, vector<8x64xf32>, vector<8x64xf32>, vector<8x64xf32>, vector<8x64xf32>, vector<8x64xf32>, vector<8x64xf32>, vector<8x64xf32> -> vector<72x64xf32>
    %cst_50 = arith.constant dense<0.000000e+00> : vector<4x64xf32>
    %66 = tpu.matmul %36, %65, %cst_50 {dimension_numbers = #tpu.dot_dimension_numbers<[1], [0], [0], [1], [0, 0, 1, 1], [], []>} : vector<4x72xf32>, vector<72x64xf32>, vector<4x64xf32> -> vector<4x64xf32>
    %67 = vector.broadcast %37 : vector<4x1xf32> to vector<4x64xf32>
    %68 = arith.addf %66, %67 : vector<4x64xf32>
    %c0_51 = arith.constant 0 : index
    %c0_52 = arith.constant 0 : index
    %c0_53 = arith.constant 0 : index
    %69 = vector.load %arg3[%c0_51, %c0_52, %c0_53] : memref<1x4x1xf32, #tpu.memory_space<vmem>>, vector<1x4x1xf32>
    %70 = vector.shape_cast %69 : vector<1x4x1xf32> to vector<4x1xf32>
    %71 = vector.broadcast %70 : vector<4x1xf32> to vector<4x64xf32>
    %72 = arith.addf %68, %71 : vector<4x64xf32>
    %c0_54 = arith.constant 0 : index
    %c0_55 = arith.constant 0 : index
    %73 = vector.load %arg9[%c0_54, %c0_55] : memref<4x4xf32, #tpu.memory_space<vmem>>, vector<4x4xf32>
    %c0_56 = arith.constant 0 : index
    %c0_57 = arith.constant 0 : index
    %74 = vector.load %arg10[%c0_56, %c0_57] : memref<4x1xf32, #tpu.memory_space<vmem>>, vector<4x1xf32>
    %c0_58 = arith.constant 0 : index
    %c0_59 = arith.constant 0 : index
    %75 = vector.load %arg11[%c0_58, %c0_59] : memref<4x1xf32, #tpu.memory_space<vmem>>, vector<4x1xf32>
    %cst_60 = arith.constant dense<0.000000e+00> : vector<4x64xf32>
    %76 = tpu.matmul %73, %72, %cst_60 {dimension_numbers = #tpu.dot_dimension_numbers<[1], [0], [0], [1], [0, 0, 1, 1], [], []>} : vector<4x4xf32>, vector<4x64xf32>, vector<4x64xf32> -> vector<4x64xf32>
    %cst_61 = arith.constant dense<0.000000e+00> : vector<4xf32>
    %77 = vector.multi_reduction <add>, %76, %cst_61 [1] : vector<4x64xf32> to vector<4xf32>
    %78 = vector.shape_cast %77 : vector<4xf32> to vector<4x1xf32>
    %cst_62 = arith.constant 7.812500e-03 : f32
    %79 = vector.broadcast %cst_62 : f32 to vector<4x1xf32>
    %80 = arith.mulf %78, %79 : vector<4x1xf32>
    %81 = vector.broadcast %80 : vector<4x1xf32> to vector<4x64xf32>
    %82 = arith.subf %72, %81 : vector<4x64xf32>
    %83 = arith.mulf %82, %82 : vector<4x64xf32>
    %cst_63 = arith.constant dense<0.000000e+00> : vector<4x64xf32>
    %84 = tpu.matmul %73, %83, %cst_63 {dimension_numbers = #tpu.dot_dimension_numbers<[1], [0], [0], [1], [0, 0, 1, 1], [], []>} : vector<4x4xf32>, vector<4x64xf32>, vector<4x64xf32> -> vector<4x64xf32>
    %cst_64 = arith.constant dense<0.000000e+00> : vector<4xf32>
    %85 = vector.multi_reduction <add>, %84, %cst_64 [1] : vector<4x64xf32> to vector<4xf32>
    %86 = vector.shape_cast %85 : vector<4xf32> to vector<4x1xf32>
    %cst_65 = arith.constant 7.812500e-03 : f32
    %87 = vector.broadcast %cst_65 : f32 to vector<4x1xf32>
    %88 = arith.mulf %86, %87 : vector<4x1xf32>
    %cst_66 = arith.constant 9.99999997E-7 : f32
    %89 = vector.broadcast %cst_66 : f32 to vector<4x1xf32>
    %90 = arith.addf %88, %89 : vector<4x1xf32>
    %91 = math.rsqrt %90 : vector<4x1xf32>
    %92 = vector.broadcast %91 : vector<4x1xf32> to vector<4x64xf32>
    %93 = arith.mulf %82, %92 : vector<4x64xf32>
    %94 = vector.broadcast %74 : vector<4x1xf32> to vector<4x64xf32>
    %95 = arith.mulf %93, %94 : vector<4x64xf32>
    %96 = vector.broadcast %75 : vector<4x1xf32> to vector<4x64xf32>
    %97 = arith.addf %95, %96 : vector<4x64xf32>
    %98 = arith.negf %97 : vector<4x64xf32>
    %99 = math.exp %98 : vector<4x64xf32>
    %cst_67 = arith.constant 1.000000e+00 : f32
    %100 = vector.broadcast %cst_67 : f32 to vector<4x64xf32>
    %101 = arith.addf %100, %99 : vector<4x64xf32>
    %102 = arith.divf %100, %101 : vector<4x64xf32>
    %103 = arith.mulf %97, %102 : vector<4x64xf32>
    %c0_68 = arith.constant 0 : index
    %c0_69 = arith.constant 0 : index
    %104 = vector.load %arg12[%c0_68, %c0_69] : memref<4x36xf32, #tpu.memory_space<vmem>>, vector<4x36xf32>
    %c0_70 = arith.constant 0 : index
    %c0_71 = arith.constant 0 : index
    %105 = vector.load %arg13[%c0_70, %c0_71] : memref<4x1xf32, #tpu.memory_space<vmem>>, vector<4x1xf32>
    %c0_72 = arith.constant 0 : index
    %c0_73 = arith.constant 0 : index
    %c0_74 = arith.constant 0 : index
    %106 = vector.load %arg18[%c0_72, %c0_73, %c0_74] : memref<9x64x64xf32, #tpu.memory_space<vmem>>, vector<1x64x64xf32>
    %107 = vector.shape_cast %106 : vector<1x64x64xf32> to vector<64x64xf32>
    %cst_75 = arith.constant dense<0.000000e+00> : vector<4x64xf32>
    %108 = tpu.matmul %103, %107, %cst_75 {dimension_numbers = #tpu.dot_dimension_numbers<[1], [0], [0], [1], [0, 0, 1, 1], [], []>} : vector<4x64xf32>, vector<64x64xf32>, vector<4x64xf32> -> vector<4x64xf32>
    %c1_76 = arith.constant 1 : index
    %c0_77 = arith.constant 0 : index
    %c0_78 = arith.constant 0 : index
    %109 = vector.load %arg18[%c1_76, %c0_77, %c0_78] : memref<9x64x64xf32, #tpu.memory_space<vmem>>, vector<1x64x64xf32>
    %110 = vector.shape_cast %109 : vector<1x64x64xf32> to vector<64x64xf32>
    %cst_79 = arith.constant dense<0.000000e+00> : vector<4x64xf32>
    %111 = tpu.matmul %103, %110, %cst_79 {dimension_numbers = #tpu.dot_dimension_numbers<[1], [0], [0], [1], [0, 0, 1, 1], [], []>} : vector<4x64xf32>, vector<64x64xf32>, vector<4x64xf32> -> vector<4x64xf32>
    %c2_80 = arith.constant 2 : index
    %c0_81 = arith.constant 0 : index
    %c0_82 = arith.constant 0 : index
    %112 = vector.load %arg18[%c2_80, %c0_81, %c0_82] : memref<9x64x64xf32, #tpu.memory_space<vmem>>, vector<1x64x64xf32>
    %113 = vector.shape_cast %112 : vector<1x64x64xf32> to vector<64x64xf32>
    %cst_83 = arith.constant dense<0.000000e+00> : vector<4x64xf32>
    %114 = tpu.matmul %103, %113, %cst_83 {dimension_numbers = #tpu.dot_dimension_numbers<[1], [0], [0], [1], [0, 0, 1, 1], [], []>} : vector<4x64xf32>, vector<64x64xf32>, vector<4x64xf32> -> vector<4x64xf32>
    %c3_84 = arith.constant 3 : index
    %c0_85 = arith.constant 0 : index
    %c0_86 = arith.constant 0 : index
    %115 = vector.load %arg18[%c3_84, %c0_85, %c0_86] : memref<9x64x64xf32, #tpu.memory_space<vmem>>, vector<1x64x64xf32>
    %116 = vector.shape_cast %115 : vector<1x64x64xf32> to vector<64x64xf32>
    %cst_87 = arith.constant dense<0.000000e+00> : vector<4x64xf32>
    %117 = tpu.matmul %103, %116, %cst_87 {dimension_numbers = #tpu.dot_dimension_numbers<[1], [0], [0], [1], [0, 0, 1, 1], [], []>} : vector<4x64xf32>, vector<64x64xf32>, vector<4x64xf32> -> vector<4x64xf32>
    %c4_88 = arith.constant 4 : index
    %c0_89 = arith.constant 0 : index
    %c0_90 = arith.constant 0 : index
    %118 = vector.load %arg18[%c4_88, %c0_89, %c0_90] : memref<9x64x64xf32, #tpu.memory_space<vmem>>, vector<1x64x64xf32>
    %119 = vector.shape_cast %118 : vector<1x64x64xf32> to vector<64x64xf32>
    %cst_91 = arith.constant dense<0.000000e+00> : vector<4x64xf32>
    %120 = tpu.matmul %103, %119, %cst_91 {dimension_numbers = #tpu.dot_dimension_numbers<[1], [0], [0], [1], [0, 0, 1, 1], [], []>} : vector<4x64xf32>, vector<64x64xf32>, vector<4x64xf32> -> vector<4x64xf32>
    %c5_92 = arith.constant 5 : index
    %c0_93 = arith.constant 0 : index
    %c0_94 = arith.constant 0 : index
    %121 = vector.load %arg18[%c5_92, %c0_93, %c0_94] : memref<9x64x64xf32, #tpu.memory_space<vmem>>, vector<1x64x64xf32>
    %122 = vector.shape_cast %121 : vector<1x64x64xf32> to vector<64x64xf32>
    %cst_95 = arith.constant dense<0.000000e+00> : vector<4x64xf32>
    %123 = tpu.matmul %103, %122, %cst_95 {dimension_numbers = #tpu.dot_dimension_numbers<[1], [0], [0], [1], [0, 0, 1, 1], [], []>} : vector<4x64xf32>, vector<64x64xf32>, vector<4x64xf32> -> vector<4x64xf32>
    %c6_96 = arith.constant 6 : index
    %c0_97 = arith.constant 0 : index
    %c0_98 = arith.constant 0 : index
    %124 = vector.load %arg18[%c6_96, %c0_97, %c0_98] : memref<9x64x64xf32, #tpu.memory_space<vmem>>, vector<1x64x64xf32>
    %125 = vector.shape_cast %124 : vector<1x64x64xf32> to vector<64x64xf32>
    %cst_99 = arith.constant dense<0.000000e+00> : vector<4x64xf32>
    %126 = tpu.matmul %103, %125, %cst_99 {dimension_numbers = #tpu.dot_dimension_numbers<[1], [0], [0], [1], [0, 0, 1, 1], [], []>} : vector<4x64xf32>, vector<64x64xf32>, vector<4x64xf32> -> vector<4x64xf32>
    %c7_100 = arith.constant 7 : index
    %c0_101 = arith.constant 0 : index
    %c0_102 = arith.constant 0 : index
    %127 = vector.load %arg18[%c7_100, %c0_101, %c0_102] : memref<9x64x64xf32, #tpu.memory_space<vmem>>, vector<1x64x64xf32>
    %128 = vector.shape_cast %127 : vector<1x64x64xf32> to vector<64x64xf32>
    %cst_103 = arith.constant dense<0.000000e+00> : vector<4x64xf32>
    %129 = tpu.matmul %103, %128, %cst_103 {dimension_numbers = #tpu.dot_dimension_numbers<[1], [0], [0], [1], [0, 0, 1, 1], [], []>} : vector<4x64xf32>, vector<64x64xf32>, vector<4x64xf32> -> vector<4x64xf32>
    %c8_104 = arith.constant 8 : index
    %c0_105 = arith.constant 0 : index
    %c0_106 = arith.constant 0 : index
    %130 = vector.load %arg18[%c8_104, %c0_105, %c0_106] : memref<9x64x64xf32, #tpu.memory_space<vmem>>, vector<1x64x64xf32>
    %131 = vector.shape_cast %130 : vector<1x64x64xf32> to vector<64x64xf32>
    %cst_107 = arith.constant dense<0.000000e+00> : vector<4x64xf32>
    %132 = tpu.matmul %103, %131, %cst_107 {dimension_numbers = #tpu.dot_dimension_numbers<[1], [0], [0], [1], [0, 0, 1, 1], [], []>} : vector<4x64xf32>, vector<64x64xf32>, vector<4x64xf32> -> vector<4x64xf32>
    %133 = tpu.concatenate %108, %111, %114, %117, %120, %123, %126, %129, %132 in 0 : vector<4x64xf32>, vector<4x64xf32>, vector<4x64xf32>, vector<4x64xf32>, vector<4x64xf32>, vector<4x64xf32>, vector<4x64xf32>, vector<4x64xf32>, vector<4x64xf32> -> vector<36x64xf32>
    %cst_108 = arith.constant dense<0.000000e+00> : vector<4x64xf32>
    %134 = tpu.matmul %104, %133, %cst_108 {dimension_numbers = #tpu.dot_dimension_numbers<[1], [0], [0], [1], [0, 0, 1, 1], [], []>} : vector<4x36xf32>, vector<36x64xf32>, vector<4x64xf32> -> vector<4x64xf32>
    %135 = vector.broadcast %105 : vector<4x1xf32> to vector<4x64xf32>
    %136 = arith.addf %134, %135 : vector<4x64xf32>
    %c0_109 = arith.constant 0 : index
    %c0_110 = arith.constant 0 : index
    %137 = vector.load %arg14[%c0_109, %c0_110] : memref<4x8xf32, #tpu.memory_space<vmem>>, vector<4x8xf32>
    %cst_111 = arith.constant dense<0.000000e+00> : vector<4x64xf32>
    %138 = tpu.matmul %137, %4, %cst_111 {dimension_numbers = #tpu.dot_dimension_numbers<[1], [0], [0], [1], [0, 0, 1, 1], [], []>} : vector<4x8xf32>, vector<8x64xf32>, vector<4x64xf32> -> vector<4x64xf32>
    %c0_112 = arith.constant 0 : index
    %c0_113 = arith.constant 0 : index
    %139 = vector.load %arg15[%c0_112, %c0_113] : memref<4x1xf32, #tpu.memory_space<vmem>>, vector<4x1xf32>
    %140 = vector.broadcast %139 : vector<4x1xf32> to vector<4x64xf32>
    %141 = arith.addf %138, %140 : vector<4x64xf32>
    %142 = arith.addf %141, %136 : vector<4x64xf32>
    %c0_114 = arith.constant 0 : index
    %c0_115 = arith.constant 0 : index
    %143 = vector.load %arg16[%c0_114, %c0_115] : memref<4x36xf32, #tpu.memory_space<vmem>>, vector<4x36xf32>
    %c0_116 = arith.constant 0 : index
    %c0_117 = arith.constant 0 : index
    %144 = vector.load %arg17[%c0_116, %c0_117] : memref<4x1xf32, #tpu.memory_space<vmem>>, vector<4x1xf32>
    %c0_118 = arith.constant 0 : index
    %c0_119 = arith.constant 0 : index
    %c0_120 = arith.constant 0 : index
    %145 = vector.load %arg19[%c0_118, %c0_119, %c0_120] : memref<9x64x256xf32, #tpu.memory_space<vmem>>, vector<1x64x256xf32>
    %146 = vector.shape_cast %145 : vector<1x64x256xf32> to vector<64x256xf32>
    %cst_121 = arith.constant dense<0.000000e+00> : vector<4x256xf32>
    %147 = tpu.matmul %142, %146, %cst_121 {dimension_numbers = #tpu.dot_dimension_numbers<[1], [0], [0], [1], [0, 0, 1, 1], [], []>} : vector<4x64xf32>, vector<64x256xf32>, vector<4x256xf32> -> vector<4x256xf32>
    %c1_122 = arith.constant 1 : index
    %c0_123 = arith.constant 0 : index
    %c0_124 = arith.constant 0 : index
    %148 = vector.load %arg19[%c1_122, %c0_123, %c0_124] : memref<9x64x256xf32, #tpu.memory_space<vmem>>, vector<1x64x256xf32>
    %149 = vector.shape_cast %148 : vector<1x64x256xf32> to vector<64x256xf32>
    %cst_125 = arith.constant dense<0.000000e+00> : vector<4x256xf32>
    %150 = tpu.matmul %142, %149, %cst_125 {dimension_numbers = #tpu.dot_dimension_numbers<[1], [0], [0], [1], [0, 0, 1, 1], [], []>} : vector<4x64xf32>, vector<64x256xf32>, vector<4x256xf32> -> vector<4x256xf32>
    %c2_126 = arith.constant 2 : index
    %c0_127 = arith.constant 0 : index
    %c0_128 = arith.constant 0 : index
    %151 = vector.load %arg19[%c2_126, %c0_127, %c0_128] : memref<9x64x256xf32, #tpu.memory_space<vmem>>, vector<1x64x256xf32>
    %152 = vector.shape_cast %151 : vector<1x64x256xf32> to vector<64x256xf32>
    %cst_129 = arith.constant dense<0.000000e+00> : vector<4x256xf32>
    %153 = tpu.matmul %142, %152, %cst_129 {dimension_numbers = #tpu.dot_dimension_numbers<[1], [0], [0], [1], [0, 0, 1, 1], [], []>} : vector<4x64xf32>, vector<64x256xf32>, vector<4x256xf32> -> vector<4x256xf32>
    %c3_130 = arith.constant 3 : index
    %c0_131 = arith.constant 0 : index
    %c0_132 = arith.constant 0 : index
    %154 = vector.load %arg19[%c3_130, %c0_131, %c0_132] : memref<9x64x256xf32, #tpu.memory_space<vmem>>, vector<1x64x256xf32>
    %155 = vector.shape_cast %154 : vector<1x64x256xf32> to vector<64x256xf32>
    %cst_133 = arith.constant dense<0.000000e+00> : vector<4x256xf32>
    %156 = tpu.matmul %142, %155, %cst_133 {dimension_numbers = #tpu.dot_dimension_numbers<[1], [0], [0], [1], [0, 0, 1, 1], [], []>} : vector<4x64xf32>, vector<64x256xf32>, vector<4x256xf32> -> vector<4x256xf32>
    %c4_134 = arith.constant 4 : index
    %c0_135 = arith.constant 0 : index
    %c0_136 = arith.constant 0 : index
    %157 = vector.load %arg19[%c4_134, %c0_135, %c0_136] : memref<9x64x256xf32, #tpu.memory_space<vmem>>, vector<1x64x256xf32>
    %158 = vector.shape_cast %157 : vector<1x64x256xf32> to vector<64x256xf32>
    %cst_137 = arith.constant dense<0.000000e+00> : vector<4x256xf32>
    %159 = tpu.matmul %142, %158, %cst_137 {dimension_numbers = #tpu.dot_dimension_numbers<[1], [0], [0], [1], [0, 0, 1, 1], [], []>} : vector<4x64xf32>, vector<64x256xf32>, vector<4x256xf32> -> vector<4x256xf32>
    %c5_138 = arith.constant 5 : index
    %c0_139 = arith.constant 0 : index
    %c0_140 = arith.constant 0 : index
    %160 = vector.load %arg19[%c5_138, %c0_139, %c0_140] : memref<9x64x256xf32, #tpu.memory_space<vmem>>, vector<1x64x256xf32>
    %161 = vector.shape_cast %160 : vector<1x64x256xf32> to vector<64x256xf32>
    %cst_141 = arith.constant dense<0.000000e+00> : vector<4x256xf32>
    %162 = tpu.matmul %142, %161, %cst_141 {dimension_numbers = #tpu.dot_dimension_numbers<[1], [0], [0], [1], [0, 0, 1, 1], [], []>} : vector<4x64xf32>, vector<64x256xf32>, vector<4x256xf32> -> vector<4x256xf32>
    %c6_142 = arith.constant 6 : index
    %c0_143 = arith.constant 0 : index
    %c0_144 = arith.constant 0 : index
    %163 = vector.load %arg19[%c6_142, %c0_143, %c0_144] : memref<9x64x256xf32, #tpu.memory_space<vmem>>, vector<1x64x256xf32>
    %164 = vector.shape_cast %163 : vector<1x64x256xf32> to vector<64x256xf32>
    %cst_145 = arith.constant dense<0.000000e+00> : vector<4x256xf32>
    %165 = tpu.matmul %142, %164, %cst_145 {dimension_numbers = #tpu.dot_dimension_numbers<[1], [0], [0], [1], [0, 0, 1, 1], [], []>} : vector<4x64xf32>, vector<64x256xf32>, vector<4x256xf32> -> vector<4x256xf32>
    %c7_146 = arith.constant 7 : index
    %c0_147 = arith.constant 0 : index
    %c0_148 = arith.constant 0 : index
    %166 = vector.load %arg19[%c7_146, %c0_147, %c0_148] : memref<9x64x256xf32, #tpu.memory_space<vmem>>, vector<1x64x256xf32>
    %167 = vector.shape_cast %166 : vector<1x64x256xf32> to vector<64x256xf32>
    %cst_149 = arith.constant dense<0.000000e+00> : vector<4x256xf32>
    %168 = tpu.matmul %142, %167, %cst_149 {dimension_numbers = #tpu.dot_dimension_numbers<[1], [0], [0], [1], [0, 0, 1, 1], [], []>} : vector<4x64xf32>, vector<64x256xf32>, vector<4x256xf32> -> vector<4x256xf32>
    %c8_150 = arith.constant 8 : index
    %c0_151 = arith.constant 0 : index
    %c0_152 = arith.constant 0 : index
    %169 = vector.load %arg19[%c8_150, %c0_151, %c0_152] : memref<9x64x256xf32, #tpu.memory_space<vmem>>, vector<1x64x256xf32>
    %170 = vector.shape_cast %169 : vector<1x64x256xf32> to vector<64x256xf32>
    %cst_153 = arith.constant dense<0.000000e+00> : vector<4x256xf32>
    %171 = tpu.matmul %142, %170, %cst_153 {dimension_numbers = #tpu.dot_dimension_numbers<[1], [0], [0], [1], [0, 0, 1, 1], [], []>} : vector<4x64xf32>, vector<64x256xf32>, vector<4x256xf32> -> vector<4x256xf32>
    %172 = tpu.concatenate %147, %150, %153, %156, %159, %162, %165, %168, %171 in 0 : vector<4x256xf32>, vector<4x256xf32>, vector<4x256xf32>, vector<4x256xf32>, vector<4x256xf32>, vector<4x256xf32>, vector<4x256xf32>, vector<4x256xf32>, vector<4x256xf32> -> vector<36x256xf32>
    %cst_154 = arith.constant dense<0.000000e+00> : vector<4x256xf32>
    %173 = tpu.matmul %143, %172, %cst_154 {dimension_numbers = #tpu.dot_dimension_numbers<[1], [0], [0], [1], [0, 0, 1, 1], [], []>} : vector<4x36xf32>, vector<36x256xf32>, vector<4x256xf32> -> vector<4x256xf32>
    %174 = vector.broadcast %144 : vector<4x1xf32> to vector<4x256xf32>
    %175 = arith.addf %173, %174 : vector<4x256xf32>
    %c0_155 = arith.constant 0 : index
    %c0_156 = arith.constant 0 : index
    %c0_157 = arith.constant 0 : index
    %176 = vector.load %arg20[%c0_155, %c0_156, %c0_157] : memref<1x4x256xf32, #tpu.memory_space<vmem>>, vector<1x4x256xf32>
    %177 = vector.shape_cast %176 : vector<1x4x256xf32> to vector<4x256xf32>
    %178 = vector.shape_cast %175 : vector<4x256xf32> to vector<1x4x256xf32>
    tpu.vector_store %arg20[%c0_155, %c0_156, %c0_157], %178 {strides = array<i32>} : memref<1x4x256xf32, #tpu.memory_space<vmem>>, vector<1x4x256xf32>,
    return
  }
  func.func @transform_0(%arg0: i32) -> (i32, i32, i32) {
    %c0_i32 = arith.constant 0 : i32
    %c0_i32_0 = arith.constant 0 : i32
    %c0_i32_1 = arith.constant 0 : i32
    return %arg0, %c0_i32, %c0_i32_0 : i32, i32, i32
  }
  func.func @transform_1(%arg0: i32) -> (i32, i32, i32) {
    %c0_i32 = arith.constant 0 : i32
    %c0_i32_0 = arith.constant 0 : i32
    %c0_i32_1 = arith.constant 0 : i32
    return %arg0, %c0_i32, %c0_i32_0 : i32, i32, i32
  }
  func.func @transform_2(%arg0: i32) -> (i32, i32, i32) {
    %c0_i32 = arith.constant 0 : i32
    %c0_i32_0 = arith.constant 0 : i32
    %c0_i32_1 = arith.constant 0 : i32
    return %arg0, %c0_i32, %c0_i32_0 : i32, i32, i32
  }
  func.func @transform_3(%arg0: i32) -> (i32, i32) {
    %c0_i32 = arith.constant 0 : i32
    %c0_i32_0 = arith.constant 0 : i32
    %c0_i32_1 = arith.constant 0 : i32
    return %c0_i32, %c0_i32_0 : i32, i32
  }
  func.func @transform_4(%arg0: i32) -> (i32, i32) {
    %c0_i32 = arith.constant 0 : i32
    %c0_i32_0 = arith.constant 0 : i32
    %c0_i32_1 = arith.constant 0 : i32
    return %c0_i32, %c0_i32_0 : i32, i32
  }
  func.func @transform_5(%arg0: i32) -> (i32, i32) {
    %c0_i32 = arith.constant 0 : i32
    %c0_i32_0 = arith.constant 0 : i32
    %c0_i32_1 = arith.constant 0 : i32
    return %c0_i32, %c0_i32_0 : i32, i32
  }
  func.func @transform_6(%arg0: i32) -> (i32, i32) {
    %c0_i32 = arith.constant 0 : i32
    %c0_i32_0 = arith.constant 0 : i32
    %c0_i32_1 = arith.constant 0 : i32
    return %c0_i32, %c0_i32_0 : i32, i32
  }
  func.func @transform_7(%arg0: i32) -> (i32, i32) {
    %c0_i32 = arith.constant 0 : i32
    %c0_i32_0 = arith.constant 0 : i32
    %c0_i32_1 = arith.constant 0 : i32
    return %c0_i32, %c0_i32_0 : i32, i32
  }
  func.func @transform_8(%arg0: i32) -> (i32, i32) {
    %c0_i32 = arith.constant 0 : i32
    %c0_i32_0 = arith.constant 0 : i32
    %c0_i32_1 = arith.constant 0 : i32
    return %c0_i32, %c0_i32_0 : i32, i32
  }
  func.func @transform_9(%arg0: i32) -> (i32, i32) {
    %c0_i32 = arith.constant 0 : i32
    %c0_i32_0 = arith.constant 0 : i32
    %c0_i32_1 = arith.constant 0 : i32
    return %c0_i32, %c0_i32_0 : i32, i32
  }
  func.func @transform_10(%arg0: i32) -> (i32, i32) {
    %c0_i32 = arith.constant 0 : i32
    %c0_i32_0 = arith.constant 0 : i32
    %c0_i32_1 = arith.constant 0 : i32
    return %c0_i32, %c0_i32_0 : i32, i32
  }
  func.func @transform_11(%arg0: i32) -> (i32, i32) {
    %c0_i32 = arith.constant 0 : i32
    %c0_i32_0 = arith.constant 0 : i32
    %c0_i32_1 = arith.constant 0 : i32
    return %c0_i32, %c0_i32_0 : i32, i32
  }
  func.func @transform_12(%arg0: i32) -> (i32, i32) {
    %c0_i32 = arith.constant 0 : i32
    %c0_i32_0 = arith.constant 0 : i32
    %c0_i32_1 = arith.constant 0 : i32
    return %c0_i32, %c0_i32_0 : i32, i32
  }
  func.func @transform_13(%arg0: i32) -> (i32, i32) {
    %c0_i32 = arith.constant 0 : i32
    %c0_i32_0 = arith.constant 0 : i32
    %c0_i32_1 = arith.constant 0 : i32
    return %c0_i32, %c0_i32_0 : i32, i32
  }
  func.func @transform_14(%arg0: i32) -> (i32, i32) {
    %c0_i32 = arith.constant 0 : i32
    %c0_i32_0 = arith.constant 0 : i32
    %c0_i32_1 = arith.constant 0 : i32
    return %c0_i32, %c0_i32_0 : i32, i32
  }
  func.func @transform_15(%arg0: i32) -> (i32, i32) {
    %c0_i32 = arith.constant 0 : i32
    %c0_i32_0 = arith.constant 0 : i32
    %c0_i32_1 = arith.constant 0 : i32
    return %c0_i32, %c0_i32_0 : i32, i32
  }
  func.func @transform_16(%arg0: i32) -> (i32, i32) {
    %c0_i32 = arith.constant 0 : i32
    %c0_i32_0 = arith.constant 0 : i32
    %c0_i32_1 = arith.constant 0 : i32
    return %c0_i32, %c0_i32_0 : i32, i32
  }
  func.func @transform_17(%arg0: i32) -> (i32, i32, i32) {
    %c0_i32 = arith.constant 0 : i32
    %c0_i32_0 = arith.constant 0 : i32
    %c0_i32_1 = arith.constant 0 : i32
    %c0_i32_2 = arith.constant 0 : i32
    return %c0_i32, %c0_i32_0, %c0_i32_1 : i32, i32, i32
  }
  func.func @transform_18(%arg0: i32) -> (i32, i32, i32) {
    %c0_i32 = arith.constant 0 : i32
    %c0_i32_0 = arith.constant 0 : i32
    %c0_i32_1 = arith.constant 0 : i32
    %c0_i32_2 = arith.constant 0 : i32
    return %c0_i32, %c0_i32_0, %c0_i32_1 : i32, i32, i32
  }
  func.func @transform_19(%arg0: i32) -> (i32, i32, i32) {
    %c0_i32 = arith.constant 0 : i32
    %c0_i32_0 = arith.constant 0 : i32
    %c0_i32_1 = arith.constant 0 : i32
    return %arg0, %c0_i32, %c0_i32_0 : i32, i32, i32
  }
}

</mosaic_0001>

<bundles_post_ra>
// kernel: up_block_forward.1
= control target key start
LH: loop header
LB: loop body
LE: loop exit
PB: predicated region body
PF: predicated region fallthrough
CT: control target
= control target key end

     0   :  { %s5649_s0 = inlined_call_operand.vmem [shape: f32[2,4,64], index: 0, kind: input, shape index: {}]   ;;  %s5650_s1 = inlined_call_operand.vmem [shape: f32[2,4,64], index: 1, kind: input, shape index: {}]   ;;  %s5651_s2 = inlined_call_operand.vmem [shape: f32[2,4,1], index: 2, kind: input, shape index: {}]   ;;  %s5652_s3 = inlined_call_operand.vmem [shape: f32[8,8], index: 3, kind: input, shape index: {}]   ;;  %s5653_s4 = inlined_call_operand.vmem [shape: f32[8,1], index: 4, kind: input, shape index: {}]   ;;  %s5654_s5 = inlined_call_operand.vmem [shape: f32[8,1], index: 5, kind: input, shape index: {}]   ;;  %s5655_s6 = inlined_call_operand.vmem [shape: f32[4,72], index: 6, kind: input, shape index: {}]   ;;  %s5656_s7 = inlined_call_operand.vmem [shape: f32[4,1], index: 7, kind: input, shape index: {}]   ;;  %s5657_s8 = inlined_call_operand.vmem [shape: f32[4,4], index: 8, kind: input, shape index: {}]   ;;  %s5658_s9 = inlined_call_operand.vmem [shape: f32[4,1], index: 9, kind: input, shape index: {}]   ;;  %s5659_s10 = inlined_call_operand.vmem [shape: f32[4,1], index: 10, kind: input, shape index: {}]   ;;  %s5660_s11 = inlined_call_operand.vmem [shape: f32[4,36], index: 11, kind: input, shape index: {}]   ;;  %s5661_s12 = inlined_call_operand.vmem [shape: f32[4,1], index: 12, kind: input, shape index: {}]   ;;  %s5662_s13 = inlined_call_operand.vmem [shape: f32[4,8], index: 13, kind: input, shape index: {}]   ;;  %s5663_s14 = inlined_call_operand.vmem [shape: f32[4,1], index: 14, kind: input, shape index: {}]   ;;  %s5664_s15 = inlined_call_operand.vmem [shape: f32[4,36], index: 15, kind: input, shape index: {}]   ;;  %s5665_s16 = inlined_call_operand.vmem [shape: f32[4,1], index: 16, kind: input, shape index: {}]   ;;  %s5666_s17 = inlined_call_operand.vmem [shape: f32[9,64,64], index: 17, kind: input, shape index: {}]   ;;  %s5667_s18 = inlined_call_operand.hbm [shape: f32[9,64,256], index: 18, kind: input, shape index: {}]   ;;  %s5668_s19 = inlined_call_operand.vmem [shape: f32[2,4,256], index: 19, kind: output, shape index: {}]  }
   0x1   :  { %5671 = sst [smem:[#allocation5_spill]] %s5649_s0 }
   0x2   :  { %5672 = sst [smem:[#allocation6_spill]] %s5650_s1 }
   0x3   :  { %5673 = sst [smem:[#allocation7_spill]] %s5651_s2 }
   0x4   :  { %5674 = sst [smem:[#allocation8_spill]] %s5652_s3 }
   0x5   :  { %24 = vsyncpa [#allocation3], 0  ;;  %s4932_s0 = smov 0  }
   0x6 LB: > { %s4938_s30 = sadd.s32 4294967295, %s4823_s0   ;;  %p3648_p0 = scmp.ge.s32.totalorder %s4823_s0, 1  ;;  %s4823_s0 = sphi %s4932_s0, %s30_s0  }
   0x7   : > { %p475_p1 = scmp.lt.s32.totalorder %s4823_s0, 3  ;;  %s4825_s20 = smov [#allocation2]  }
   0x8   : > { %s532_s21 = sshll.u32 %s4825_s20, 4  ;;  %p5669_p3 = scmp.eq.s32.totalorder %s4938_s30, 0  ;;  %s533_s21 = int_to_ptr.vmem [resolvable:$true] %s532_s21 }
   0x9   : > { %p4942_p2 = pnand %p3648_p0, %p475_p1  ;;  %s4785_s24 = scalar_lea.hbm %s5667_s18, 18432 }
   0xa   : > { %p4786_p6 = scmp.ne.s32.totalorder %s5667_s18, %s4785_s24  ;;  %p4792_p10 = scmp.lt.u32.totalorder %s4785_s24, %s5667_s18 }
   0xb   : > { %s5675_s1 = scalar_select %p4942_p2, 1, 0 }
   0xc   : > { %p4750_p4 = pneg %p4942_p2 }
   0xe   : > { %p4951_p5 = pnand %p5669_p3, %p4750_p4 }
  0x10   : > { %p4787_p7 = pneg %p4951_p5 }
  0x12   : > { %p4788_p8 = pnand %p4787_p7, %p4786_p6 }
  0x14   : > { %p4789_p9 = pneg %p4788_p8 }
  0x16   : > { %p4794_p11 = pnand %p4792_p10, %p4789_p9 }
  0x18   : > { %4797 = shalt.err (!%p4794_p11)
}
  0x19   : > { %s4798_s28 = scalar_lea.vmem %s533_s21, 18432  ;;  %p4806_p1 = scmp.lt.s32.totalorder %s533_s21, %s533_s21 }
  0x1a   : > { %p4799_p12 = scmp.ne.s32.totalorder %s533_s21, %s4798_s28  ;;  %p4807_p4 = scmp.lt.s32.totalorder %s4798_s28, %s4798_s28 }
  0x1c   : > { %p4801_p13 = pnand %p4799_p12, %p4787_p7  ;;  %p4808_p3 = por %p4807_p4, %p4806_p1 }
  0x1e   : > { %p4802_p0 = pneg %p4801_p13 }
  0x20   : > { %p4809_p2 = pnand %p4808_p3, %p4802_p0 }
  0x22   : > { %4812 = shalt.err (!%p4809_p2)
}
  0x23   : > { %s4826_s29 = smov 256   ;;  %s4827_s20 = smov 16  }
  0x24   : > { %4753 = dma.hbm_to_vmem [thread:$0]  (!%p4951_p5), %s5667_s18, 18432, %s533_s21, [#allocation3], %s4826_s29, %s4826_s29, %s4827_s20  }
  0x25   : > { %p5677_p6 = scmp.ne.s32.totalorder %s5675_s1, 0 }
  0x26   : > { %p5678_p8 = scmp.eq.s32.totalorder (!%p5677_p6), %s4938_s30, 0 }
  0x27   : > { %569 = sbr.rel (%p5677_p6) target bundleno = 3082 (0xc0a), region = 96 }
  0x2e   : > { %4818 = dma.done.wait (%p5678_p8), [#allocation3], 18432   ;;  %p5679_p7 = pmov %p5678_p8 }
  0x2f   : > { %p632_p2 = scmp.lt.s32.totalorder %s4938_s30, 1  ;;  %v4828_v0 = vmov 0.0   ;;  %vm4829_vm0 = vmmov 0   ;;  %s5680_s24 = sld [smem:[#allocation5_spill]]  ;;  %vm654_vm1 = vcmask 1043456   ;;  %vm659_vm2 = vcmask 64512  }
  0x30   : > { %4820 = vsyncadd (%p5679_p7), [#allocation3], 4294948864  ;;  %3955 = vmatprep.subr.mxu1 %v4828_v0  ;;  %3957 = vmatprep.mubr.msk.f32.mxu1 %vm4829_vm0, %v4828_v0  ;;  %s5681_s27 = sld [smem:[#allocation6_spill]]  ;;  %s5682_s2 = sld [smem:[#allocation8_spill]]  ;;  %vm733_vm3 = vcmask 523264   ;;  %v657_v13 = vld [vmem:[%s5653_s4] sm:$0xff] }
  0x31   : > { %s5685_s30 = smov (!%p632_p2, %s4938_s30), 1  ;;  %3981 = vmatprep.mubr.msk.f32.mxu0 %vm4829_vm0, %v4828_v0  ;;  %v4830_v14 = vmov 0   ;;  %v658_v15 = vld [vmem:[%s5654_s5] sm:$0xff]  ;;  %s5683_s26 = sld [smem:[#allocation7_spill]]  ;;  %v839_v21 = vld [vmem:[%s5666_s17 + $0x8] sm:$0xff]  ;;  %v4831_v25 = vmov 0.0|0.0  }
  0x32   : > { %s4987_s21 = sshll.u32 %s5685_s30, 2  ;;  %4771 = vset.pattern.permute.xlu1 %v4830_v14  ;;  %4772 = vset.pattern.permute.xlu0 %v4830_v14  ;;  %v838_v20 = vld [vmem:[%s5666_s17] sm:$0xff]  ;;  %v3663_v24 = vld [vmem:[%s5666_s17 + $0x48] sm:$0xff]  ;;  %v840_v27 = vld [vmem:[%s5666_s17 + $0x10] sm:$0xff]  ;;  %vm1556_vm4 = vcmask 588800   ;;  %vm1640_vm5 = vcmask 31744  }
  0x33   : > { %819 = vperm.xlu1 %4771, %v657_v13   ;;  %v3662_v22 = vld [vmem:[%s5666_s17 + $0x40] sm:$0xff]  ;;  %v5037_v23 = vpack.c.bf16 %v839_v21, %v838_v20  ;;  %4356 = vmatprep.subr.bf16.mxu0 %v4831_v25  ;;  %v841_v28 = vld [vmem:[%s5666_s17 + $0x18] sm:$0xff]  ;;  %v3664_v29 = vld [vmem:[%s5666_s17 + $0x50] sm:$0xff]  ;;  %vm1717_vm6 = vcmask 519168   ;;  %vm2479_vm7 = vcmask 293888   ;;  %s3766_s3 = sshll.u32 %s5685_s30, 3 }
  0x34   : > { %v5044_v26 = vpack.c.bf16 %v3663_v24, %v3662_v22  ;;  %v5059_v30 = vpack.c.bf16 %v841_v28, %v840_v27  ;;  %v3665_v31 = vld [vmem:[%s5666_s17 + $0x58] sm:$0xff]  ;;  %v842_v33 = vld [vmem:[%s5666_s17 + $0x20] sm:$0xff]  ;;  %v843_v34 = vld [vmem:[%s5666_s17 + $0x28] sm:$0xff] }
  0x35   : > { %s635_s25 = scalar_lea.vmem %s5680_s24, %s4987_s21  ;;  %4358 = vmatpush3.bf16.msra.mxu0 %v5037_v23  ;;  %v5064_v32 = vpack.c.bf16 %v3665_v31, %v3664_v29  ;;  %v3666_v35 = vld [vmem:[%s5666_s17 + $0x60] sm:$0xff]  ;;  %v5079_v36 = vpack.c.bf16 %v843_v34, %v842_v33  ;;  %v3667_v37 = vld [vmem:[%s5666_s17 + $0x68] sm:$0xff]  ;;  %v844_v39 = vld [vmem:[%s5666_s17 + $0x30] sm:$0xff] }
  0x36   : > { %s639_s28 = scalar_lea.vmem %s5681_s27, %s4987_s21  ;;  %v649_v1 = vld [vmem:[%s635_s25] sm:$0xf]  ;;  %4359 = vmatprep.subr.bf16.mxu0 %v4831_v25  ;;  %v5084_v38 = vpack.c.bf16 %v3667_v37, %v3666_v35  ;;  %v845_v40 = vld [vmem:[%s5666_s17 + $0x38] sm:$0xff]  ;;  %v3668_v41 = vld [vmem:[%s5666_s17 + $0x70] sm:$0xff] }
  0x37   : > { %v650_v2 = vld [vmem:[%s639_s28] sm:$0xf]  ;;  %s643_s27 = scalar_lea.vmem %s5683_s26, %s4987_s21  ;;  %825 = vperm.xlu1 %4771, %v658_v15   ;;  %v5099_v42 = vpack.c.bf16 %v845_v40, %v844_v39  ;;  %v3669_v43 = vld [vmem:[%s5666_s17 + $0x78] sm:$0xff]  ;;  %v3672_v58 = vld [vmem:[%s5666_s17 + $0x88] sm:$0xff]  ;;  %s648_s28 = scalar_lea.vmem %s5668_s19, %s3766_s3 }
  0x38   : > { %v652_v3 = vrot.slane %v650_v2, 4  ;;  %v656_v4 = vld [vmem:[%s5682_s2] sm:$0xff]  ;;  %v5104_v44 = vpack.c.bf16 %v3669_v43, %v3668_v41  ;;  %v3681_v60 = vld [vmem:[%s5666_s17 + $0xc8] sm:$0xff]  ;;  %v3677_v15 = vld [vmem:[%s5666_s17 + $0xb0] sm:$0xff] }
  0x39   : > { %v1630_v16 = vld [vmem:[%s643_s27] sm:$0xf]  ;;  %4361 = vmatpush3.bf16.msra.mxu0 %v5059_v30  ;;  %v3690_v22 = vld [vmem:[%s5666_s17 + $0x108] sm:$0xff]  ;;  %v3691_v31 = vld [vmem:[%s5666_s17 + $0x110] sm:$0xff] }
  0x3a   : > { %v5001_v5 = vsel %vm654_vm1, %v649_v1, %v652_v3  ;;  %4362 = vmatprep.subr.bf16.mxu0 %v4831_v25  ;;  %v3671_v57 = vld [vmem:[%s5666_s17 + $0x80] sm:$0xff]  ;;  %v3673_v1 = vld [vmem:[%s5666_s17 + $0x90] sm:$0xff]  ;;  %v3674_v3 = vld [vmem:[%s5666_s17 + $0x98] sm:$0xff] }
  0x3b   : > { %3956 = vmatpush3.msra.mxu1 %v5001_v5  ;;  %1633 = vperm.xlu1 %4771, %v1630_v16   ;;  %v3680_v59 = vld [vmem:[%s5666_s17 + $0xc0] sm:$0xff]  ;;  %v5123_v62 = vpack.c.bf16 %v3672_v58, %v3671_v57  ;;  %v3678_v16 = vld [vmem:[%s5666_s17 + $0xb8] sm:$0xff]  ;;  %v3699_v27 = vld [vmem:[%s5666_s17 + $0x148] sm:$0xff] }
  0x3c   : > { %3958 = vmatmul.mubr.msk.f32.vlgmr.msra.gmra.mrb[0].mxu1 %vm659_vm2, %v656_v4  ;;  %3960 = vmatprep.subr.mxu1 %v4828_v0  ;;  %v5125_v63 = vpack.c.bf16 %v3681_v60, %v3680_v59  ;;  %v3689_v21 = vld [vmem:[%s5666_s17 + $0x100] sm:$0xff]  ;;  %v3692_v33 = vld [vmem:[%s5666_s17 + $0x118] sm:$0xff]  ;;  %v3700_v34 = vld [vmem:[%s5666_s17 + $0x150] sm:$0xff] }
  0x3d   : > { %3962 = vmatprep.mubr.msk.f32.mxu1 %vm4829_vm0, %v4828_v0  ;;  %4364 = vmatpush3.bf16.msra.mxu0 %v5079_v36  ;;  %v3698_v24 = vld [vmem:[%s5666_s17 + $0x140] sm:$0xff]  ;;  %v5211_v28 = vpack.c.bf16 %v3690_v22, %v3689_v21  ;;  %v3701_v35 = vld [vmem:[%s5666_s17 + $0x158] sm:$0xff]  ;;  %v5235_v37 = vpack.c.bf16 %v3692_v33, %v3691_v31  ;;  %v3694_v41 = vld [vmem:[%s5666_s17 + $0x128] sm:$0xff] }
  0x3e   : > { %4365 = vmatprep.subr.bf16.mxu0 %v4831_v25  ;;  %v5213_v29 = vpack.c.bf16 %v3699_v27, %v3698_v24  ;;  %v5237_v39 = vpack.c.bf16 %v3701_v35, %v3700_v34  ;;  %v3693_v40 = vld [vmem:[%s5666_s17 + $0x120] sm:$0xff]  ;;  %v3717_v57 = vld [vmem:[%s5666_s17 + $0x1c8] sm:$0xff]  ;;  %v3709_v60 = vld [vmem:[%s5666_s17 + $0x190] sm:$0xff] }
  0x3f   : > { %v3702_v43 = vld [vmem:[%s5666_s17 + $0x160] sm:$0xff]  ;;  %v3722_v21 = vld [vmem:[%s5666_s17 + $0x1f0] sm:$0xff]  ;;  %v3723_v22 = vld [vmem:[%s5666_s17 + $0x1f8] sm:$0xff] }
  0x40   : > { %v5369_v27 = vpack.c.bf16 %v3723_v22, %v3722_v21  ;;  %v3725_v31 = vld [vmem:[%s5666_s17 + $0x200] sm:$0xff]  ;;  %v3726_v33 = vld [vmem:[%s5666_s17 + $0x208] sm:$0xff]  ;;  %v3727_v35 = vld [vmem:[%s5666_s17 + $0x210] sm:$0xff] }
  0x41   : > { %4367 = vmatpush3.bf16.msra.mxu0 %v5099_v42  ;;  %v5381_v34 = vpack.c.bf16 %v3726_v33, %v3725_v31 }
  0x42   : > { %4380 = vmatprep.subr.bf16.mxu0 %v4831_v25 }
  0xb2   : > { %v820_v48 = vpop.permute.xlu1 %819 }
  0xb6   : > { %v826_v52 = vpop.permute.xlu1 %825 }
 0x10f   : > { %v729_v6 = vpop.f32.mrb[0].mxu1 }
 0x110   : > { %v3959_v7 = vpop.f32.mrb[1].mxu1  ;;  %v734_v8 = vsel %vm733_vm3, %v729_v6, 0.0  ;;  %v3683_v6 = vld [vmem:[%s5666_s17 + $0xd8] sm:$0xff] }
 0x111   : > { %735 = vadd.xlane.f32.xlu0 %v734_v8  ;;  %v5147_v7 = vpack.c.bf16 %v3674_v3, %v3673_v1  ;;  %v3718_v1 = vld [vmem:[%s5666_s17 + $0x1d0] sm:$0xff]  ;;  %v3719_v3 = vld [vmem:[%s5666_s17 + $0x1d8] sm:$0xff] }
 0x19e   : > { %v736_v9 = vpop.xlane.xlu0 %735 }
 0x19f   : > { %v737_v10 = vmul.f32 0.00390625, %v736_v9  ;;  %v3675_v9 = vld [vmem:[%s5666_s17 + $0xa0] sm:$0xff] }
 0x1a1   : > { %v5010_v11 = vsub.f32 %v5001_v5, %v737_v10  ;;  %v3676_v10 = vld [vmem:[%s5666_s17 + $0xa8] sm:$0xff] }
 0x1a2   : > { %v5171_v13 = vpack.c.bf16 %v3676_v10, %v3675_v9  ;;  %v3711_v9 = vld [vmem:[%s5666_s17 + $0x1a0] sm:$0xff]  ;;  %v3712_v10 = vld [vmem:[%s5666_s17 + $0x1a8] sm:$0xff] }
 0x1a3   : > { %v739_v12 = vmul.f32 %v5010_v11, %v5010_v11 }
 0x1a5   : > { %3961 = vmatpush3.msra.mxu1 %v739_v12  ;;  %v3685_v12 = vld [vmem:[%s5666_s17 + $0xe8] sm:$0xff] }
 0x1a6   : > { %3963 = vmatmul.mubr.msk.f32.vlgmr.msra.gmra.mrb[2].mxu1 %vm659_vm2, %v656_v4  ;;  %4368 = vmatprep.subr.bf16.mxu1 %v4831_v25  ;;  %v3682_v4 = vld [vmem:[%s5666_s17 + $0xd0] sm:$0xff] }
 0x1a7   : > { %4000 = vmatprep.mubr.msk.f32.mxu1 %vm4829_vm0, %v4828_v0  ;;  %4370 = vmatpush3.bf16.msra.mxu1 %v5044_v26  ;;  %v5149_v8 = vpack.c.bf16 %v3683_v6, %v3682_v4  ;;  %v5325_v6 = vpack.c.bf16 %v3719_v3, %v3718_v1 }
 0x1a8   : > { %4371 = vmatprep.subr.bf16.mxu1 %v4831_v25 }
 0x1ab   : > { %4373 = vmatpush3.bf16.msra.mxu1 %v5064_v32 }
 0x1ac   : > { %4374 = vmatprep.subr.bf16.mxu1 %v4831_v25 }
 0x1af   : > { %4376 = vmatpush3.bf16.msra.mxu1 %v5084_v38 }
 0x1b0   : > { %4377 = vmatprep.subr.bf16.mxu1 %v4831_v25 }
 0x1b3   : > { %4379 = vmatpush3.bf16.msra.mxu1 %v5104_v44 }
 0x1b4   : > { %4392 = vmatprep.subr.bf16.mxu1 %v4831_v25 }
 0x279   : > { %v806_v17 = vpop.f32.mrb[2].mxu1 }
 0x27a   : > { %v3964_v18 = vpop.f32.mrb[3].mxu1  ;;  %v810_v19 = vsel %vm733_vm3, %v806_v17, 0.0  ;;  %v3686_v17 = vld [vmem:[%s5666_s17 + $0xf0] sm:$0xff] }
 0x27b   : > { %811 = vadd.xlane.f32.xlu0 %v810_v19  ;;  %v3687_v18 = vld [vmem:[%s5666_s17 + $0xf8] sm:$0xff]  ;;  %v5191_v19 = vpack.c.bf16 %v3678_v16, %v3677_v15  ;;  %v5347_v15 = vpack.c.bf16 %v3712_v10, %v3711_v9 }
 0x27c   : > { %v5193_v20 = vpack.c.bf16 %v3687_v18, %v3686_v17  ;;  %v3713_v17 = vld [vmem:[%s5666_s17 + $0x1b0] sm:$0xff]  ;;  %v3714_v18 = vld [vmem:[%s5666_s17 + $0x1b8] sm:$0xff] }
 0x27d   : > { %v5367_v24 = vpack.c.bf16 %v3714_v18, %v3713_v17 }
 0x308   : > { %v812_v45 = vpop.xlane.xlu0 %811 }
 0x309   : > { %v813_v46 = vmul.f32 0.00390625, %v812_v45  ;;  %v3703_v45 = vld [vmem:[%s5666_s17 + $0x168] sm:$0xff] }
 0x30b   : > { %v814_v47 = vadd.f32 1e-06, %v813_v46  ;;  %v5259_v46 = vpack.c.bf16 %v3694_v41, %v3693_v40  ;;  %v3728_v40 = vld [vmem:[%s5666_s17 + $0x218] sm:$0xff] }
 0x30c   : > { %v5396_v41 = vpack.c.bf16 %v3728_v40, %v3727_v35 }
 0x30d   : > { %4773 = vrsqrt.f32 %v814_v47  ;;  %v5261_v47 = vpack.c.bf16 %v3703_v45, %v3702_v43  ;;  %v3729_v43 = vld [vmem:[%s5666_s17 + $0x220] sm:$0xff]  ;;  %v3730_v45 = vld [vmem:[%s5666_s17 + $0x228] sm:$0xff] }
 0x317   : > { %v4774_v49 = vpop.eup %4773 }
 0x318   : > { %v816_v50 = vmul.f32 %v4774_v49, %v5010_v11  ;;  %v3684_v11 = vld [vmem:[%s5666_s17 + $0xe0] sm:$0xff]  ;;  %v3696_v49 = vld [vmem:[%s5666_s17 + $0x138] sm:$0xff] }
 0x319   : > { %v5173_v14 = vpack.c.bf16 %v3685_v12, %v3684_v11  ;;  %v3720_v11 = vld [vmem:[%s5666_s17 + $0x1e0] sm:$0xff]  ;;  %v3721_v12 = vld [vmem:[%s5666_s17 + $0x1e8] sm:$0xff] }
 0x31a   : > { %v822_v51 = vmul.f32 %v820_v48, %v816_v50  ;;  %v3695_v48 = vld [vmem:[%s5666_s17 + $0x130] sm:$0xff]  ;;  %v5349_v16 = vpack.c.bf16 %v3721_v12, %v3720_v11 }
 0x31b   : > { %v3704_v50 = vld [vmem:[%s5666_s17 + $0x170] sm:$0xff] }
 0x31c   : > { %v828_v53 = vadd.f32 %v826_v52, %v822_v51  ;;  %v3705_v51 = vld [vmem:[%s5666_s17 + $0x178] sm:$0xff]  ;;  %v5279_v52 = vpack.c.bf16 %v3696_v49, %v3695_v48  ;;  %v5410_v48 = vpack.c.bf16 %v3730_v45, %v3729_v43  ;;  %v3731_v49 = vld [vmem:[%s5666_s17 + $0x230] sm:$0xff] }
 0x31e   : > { %v3660_v54 = vmul.f32 -1.442695, %v828_v53 }
 0x320   : > { %4775 = vpow2.f32 %v3660_v54  ;;  %v3707_v54 = vld [vmem:[%s5666_s17 + $0x180] sm:$0xff] }
 0x32a   : > { %v4776_v55 = vpop.eup %4775 }
 0x32b   : > { %v832_v56 = vadd.f32 1.0, %v4776_v55  ;;  %v3708_v55 = vld [vmem:[%s5666_s17 + $0x188] sm:$0xff] }
 0x32c   : > { %v5299_v58 = vpack.c.bf16 %v3708_v55, %v3707_v54  ;;  %v837_v54 = vld [vmem:[%s5656_s7] sm:$0xf] }
 0x32d   : > { %4777 = vrcp.f32 %v832_v56  ;;  %v3716_v56 = vld [vmem:[%s5666_s17 + $0x1c0] sm:$0xff]  ;;  %1553 = vperm.xlu0 %4772, %v837_v54  }
 0x32e   : > { %v5301_v59 = vpack.c.bf16 %v3717_v57, %v3716_v56  ;;  %v1638_v55 = vld [vmem:[%s5658_s9] sm:$0xf] }
 0x32f   : > { %v1824_v56 = vld [vmem:[%s5661_s12] sm:$0xf] }
 0x330   : > { %v2638_v57 = vld [vmem:[%s5665_s16] sm:$0xf] }
 0x331   : > { %1806 = vperm.xlu0 %4772, %v1638_v55   ;;  %v836_v54 = vld [vmem:[%s5655_s6] sm:$0xf] }
 0x335   : > { %2476 = vperm.xlu0 %4772, %v1824_v56  }
 0x337   : > { %v4778_v61 = vpop.eup %4777 }
 0x338   : > { %v5130_v2 = vmul.f32 %v4778_v61, %v828_v53  ;;  %v5281_v53 = vpack.c.bf16 %v3705_v51, %v3704_v50  ;;  %v3710_v61 = vld [vmem:[%s5666_s17 + $0x198] sm:$0xff] }
 0x339   : > { %v5323_v4 = vpack.c.bf16 %v3710_v61, %v3709_v60  ;;  %v3732_v50 = vld [vmem:[%s5666_s17 + $0x238] sm:$0xff] }
 0x33a   : > { %3982 = vmatmul.mubr.msk.f32.vlgmr.msra.gmra.mrb[0].mxu0 %vm733_vm3, %v5130_v2  ;;  %4001 = vmatmul.mubr.msk.f32.vlgmr.msra.gmra.mrb[4].mxu1 %vm733_vm3, %v5130_v2  ;;  %v5420_v51 = vpack.c.bf16 %v3732_v50, %v3731_v49 }
 0x33b   : > { %4382 = vmatpush3.bf16.msra.mxu0 %v5123_v62  ;;  %4394 = vmatpush3.bf16.msra.mxu1 %v5125_v63 }
 0x33c   : > { %4383 = vmatprep.subr.bf16.mxu0 %v4831_v25  ;;  %4395 = vmatprep.subr.bf16.mxu1 %v4831_v25 }
 0x33d   : > { %4019 = vmatprep.mubr.msk.f32.mxu0 %vm4829_vm0, %v4828_v0  ;;  %4038 = vmatprep.mubr.msk.f32.mxu1 %vm4829_vm0, %v4828_v0 }
 0x33f   : > { %4385 = vmatpush3.bf16.msra.mxu0 %v5147_v7  ;;  %4397 = vmatpush3.bf16.msra.mxu1 %v5149_v8 }
 0x340   : > { %4386 = vmatprep.subr.bf16.mxu0 %v4831_v25  ;;  %4398 = vmatprep.subr.bf16.mxu1 %v4831_v25 }
 0x343   : > { %4388 = vmatpush3.bf16.msra.mxu0 %v5171_v13  ;;  %4400 = vmatpush3.bf16.msra.mxu1 %v5173_v14 }
 0x344   : > { %4389 = vmatprep.subr.bf16.mxu0 %v4831_v25  ;;  %4401 = vmatprep.subr.bf16.mxu1 %v4831_v25 }
 0x347   : > { %4391 = vmatpush3.bf16.msra.mxu0 %v5191_v19  ;;  %4403 = vmatpush3.bf16.msra.mxu1 %v5193_v20 }
 0x348   : > { %4404 = vmatprep.subr.bf16.mxu0 %v4831_v25  ;;  %4416 = vmatprep.subr.bf16.mxu1 %v4831_v25 }
 0x34a   : > { %4020 = vmatmul.mubr.msk.f32.vlgmr.msra.gmra.mrb[2].mxu0 %vm733_vm3, %v5130_v2  ;;  %4039 = vmatmul.mubr.msk.f32.vlgmr.msra.gmra.mrb[6].mxu1 %vm733_vm3, %v5130_v2 }
 0x34b   : > { %4406 = vmatpush3.bf16.msra.mxu0 %v5211_v28  ;;  %4418 = vmatpush3.bf16.msra.mxu1 %v5213_v29 }
 0x34c   : > { %4407 = vmatprep.subr.bf16.mxu0 %v4831_v25  ;;  %4419 = vmatprep.subr.bf16.mxu1 %v4831_v25 }
 0x34d   : > { %4057 = vmatprep.mubr.msk.f32.mxu0 %vm4829_vm0, %v4828_v0  ;;  %4076 = vmatprep.mubr.msk.f32.mxu1 %vm4829_vm0, %v4828_v0 }
 0x34f   : > { %4409 = vmatpush3.bf16.msra.mxu0 %v5235_v37  ;;  %4421 = vmatpush3.bf16.msra.mxu1 %v5237_v39 }
 0x350   : > { %4410 = vmatprep.subr.bf16.mxu0 %v4831_v25  ;;  %4422 = vmatprep.subr.bf16.mxu1 %v4831_v25 }
 0x353   : > { %4412 = vmatpush3.bf16.msra.mxu0 %v5259_v46  ;;  %4424 = vmatpush3.bf16.msra.mxu1 %v5261_v47 }
 0x354   : > { %4413 = vmatprep.subr.bf16.mxu0 %v4831_v25  ;;  %4425 = vmatprep.subr.bf16.mxu1 %v4831_v25 }
 0x357   : > { %4415 = vmatpush3.bf16.msra.mxu0 %v5279_v52  ;;  %4427 = vmatpush3.bf16.msra.mxu1 %v5281_v53 }
 0x358   : > { %4428 = vmatprep.subr.bf16.mxu0 %v4831_v25  ;;  %4440 = vmatprep.subr.bf16.mxu1 %v4831_v25 }
 0x35a   : > { %4058 = vmatmul.mubr.msk.f32.vlgmr.msra.gmra.mrb[4].mxu0 %vm733_vm3, %v5130_v2  ;;  %4077 = vmatmul.mubr.msk.f32.vlgmr.msra.gmra.mrb[8].mxu1 %vm733_vm3, %v5130_v2 }
 0x35b   : > { %4430 = vmatpush3.bf16.msra.mxu0 %v5299_v58  ;;  %4442 = vmatpush3.bf16.msra.mxu1 %v5301_v59 }
 0x35c   : > { %4431 = vmatprep.subr.bf16.mxu0 %v4831_v25  ;;  %4443 = vmatprep.subr.bf16.mxu1 %v4831_v25 }
 0x35d   : > { %4095 = vmatprep.mubr.msk.f32.mxu0 %vm4829_vm0, %v4828_v0  ;;  %4114 = vmatprep.mubr.msk.f32.mxu1 %vm4829_vm0, %v4828_v0 }
 0x35f   : > { %4433 = vmatpush3.bf16.msra.mxu0 %v5323_v4  ;;  %4445 = vmatpush3.bf16.msra.mxu1 %v5325_v6 }
 0x360   : > { %4434 = vmatprep.subr.bf16.mxu0 %v4831_v25  ;;  %4446 = vmatprep.subr.bf16.mxu1 %v4831_v25 }
 0x363   : > { %4436 = vmatpush3.bf16.msra.mxu0 %v5347_v15  ;;  %4448 = vmatpush3.bf16.msra.mxu1 %v5349_v16 }
 0x364   : > { %4437 = vmatprep.subr.bf16.mxu0 %v4831_v25  ;;  %4449 = vmatprep.subr.bf16.mxu1 %v4831_v25 }
 0x367   : > { %4439 = vmatpush3.bf16.msra.mxu0 %v5367_v24  ;;  %4451 = vmatpush3.bf16.msra.mxu1 %v5369_v27 }
 0x368   : > { %4452 = vmatprep.subr.bf16.mxu0 %v4831_v25  ;;  %4464 = vmatprep.subr.bf16.mxu1 %v4831_v25 }
 0x36a   : > { %4096 = vmatmul.mubr.msk.f32.vlgmr.msra.gmra.mrb[6].mxu0 %vm733_vm3, %v5130_v2  ;;  %4115 = vmatmul.mubr.msk.f32.vlgmr.msra.gmra.mrb[10].mxu1 %vm733_vm3, %v5130_v2 }
 0x36b   : > { %4454 = vmatpush3.bf16.msra.mxu0 %v5381_v34  ;;  %4133 = vmatprep.mubr.msk.f32.mxu0 %vm4829_vm0, %v4828_v0 }
 0x36c   : > { %4455 = vmatprep.subr.bf16.mxu0 %v4831_v25  ;;  %4154 = vmatprep.mubr.msk.f32.mxu1 %vm4829_vm0, %v4828_v0 }
 0x36f   : > { %4457 = vmatpush3.bf16.msra.mxu0 %v5396_v41 }
 0x370   : > { %4458 = vmatprep.subr.bf16.mxu0 %v4831_v25 }
 0x373   : > { %4460 = vmatpush3.bf16.msra.mxu0 %v5410_v48 }
 0x374   : > { %4461 = vmatprep.subr.bf16.mxu0 %v4831_v25 }
 0x377   : > { %4463 = vmatpush3.bf16.msra.mxu0 %v5420_v51 }
 0x378   : > { %4157 = vmatprep.subr.mxu0 %v4828_v0 }
 0x37a   : > { %4134 = vmatmul.mubr.msk.f32.vlgmr.msra.gmra.mrb[8].mxu0 %vm733_vm3, %v5130_v2  ;;  %v2557_v2 = vld [vmem:[%s5663_s14] sm:$0xf] }
 0x37b   : > { %4159 = vmatprep.mubr.msk.f32.mxu0 %vm4829_vm0, %v4828_v0  ;;  %2560 = vperm.xlu0 %4772, %v2557_v2  }
 0x37f   : > { %3467 = vperm.xlu0 %4772, %v2638_v57  }
 0x3ac   : > { %v1554_v2 = vpop.permute.xlu0 %1553 }
 0x40d   : > { %v915_v60 = vpop.f32.mrb[0].mxu0  ;;  %v994_v61 = vpop.f32.mrb[4].mxu1 }
 0x40e   : > { %v4465_v1 = vpack.c.bf16 %v994_v61, %v915_v60  ;;  %v3983_v3 = vpop.f32.mrb[1].mxu0  ;;  %v4002_v9 = vpop.f32.mrb[5].mxu1 }
 0x40f   : > { %v1637_v9 = vld [vmem:[%s5657_s8] sm:$0xf] }
 0x410   : > { %4466 = vmatpush3.bf16.msra.mxu1 %v4465_v1  ;;  %v1634_v1 = vpop.permute.xlu1 %1633 }
 0x411   : > { %4467 = vmatprep.subr.bf16.mxu1 %v4831_v25 }
 0x41d   : > { %v1073_v10 = vpop.f32.mrb[2].mxu0  ;;  %v1152_v11 = vpop.f32.mrb[6].mxu1 }
 0x41e   : > { %v4468_v12 = vpack.c.bf16 %v1152_v11, %v1073_v10  ;;  %v4021_v17 = vpop.f32.mrb[3].mxu0  ;;  %v4040_v18 = vpop.f32.mrb[7].mxu1 }
 0x420   : > { %4469 = vmatpush3.bf16.msra.mxu1 %v4468_v12 }
 0x421   : > { %4470 = vmatprep.subr.bf16.mxu1 %v4831_v25 }
 0x42d   : > { %v1231_v21 = vpop.f32.mrb[4].mxu0  ;;  %v1310_v22 = vpop.f32.mrb[8].mxu1 }
 0x42e   : > { %v4471_v31 = vpack.c.bf16 %v1310_v22, %v1231_v21  ;;  %v4059_v33 = vpop.f32.mrb[5].mxu0  ;;  %v4078_v35 = vpop.f32.mrb[9].mxu1  ;;  %v1639_v21 = vld [vmem:[%s5659_s10] sm:$0xf] }
 0x42f   : > { %v1807_v35 = vpop.permute.xlu0 %1806 }
 0x430   : > { %4472 = vmatpush3.bf16.msra.mxu1 %v4471_v31 }
 0x431   : > { %4473 = vmatprep.subr.bf16.mxu1 %v4831_v25 }
 0x43d   : > { %v1389_v40 = vpop.f32.mrb[6].mxu0  ;;  %v1468_v43 = vpop.f32.mrb[10].mxu1 }
 0x43e   : > { %v4474_v45 = vpack.c.bf16 %v1468_v43, %v1389_v40  ;;  %v4097_v49 = vpop.f32.mrb[7].mxu0  ;;  %v4116_v50 = vpop.f32.mrb[11].mxu1 }
 0x440   : > { %4475 = vmatpush3.bf16.msra.mxu1 %v4474_v45 }
 0x441   : > { %4152 = vmatprep.subr.mxu1 %v4828_v0 }
 0x44d   : > { %v1547_v55 = vpop.f32.mrb[8].mxu0 }
 0x44e   : > { %v4135_v56 = vpop.f32.mrb[9].mxu0  ;;  %4153 = vmatpush3.msra.mxu1 %v1547_v55 }
 0x44f   : > { %4155 = vmatmul.mubr.msk.f32.vlgmr.msra.gmra.mrb[12].mxu1 %vm1556_vm4, %v836_v54  ;;  %4162 = vmatprep.subr.mxu1 %v4828_v0 }
 0x450   : > { %4164 = vmatprep.mubr.msk.f32.mxu1 %vm4829_vm0, %v4828_v0 }
 0x522   : > { %v1626_v57 = vpop.f32.mrb[12].mxu1 }
 0x523   : > { %v1627_v60 = vadd.f32 %v1626_v57, %v1554_v2  ;;  %v4156_v61 = vpop.f32.mrb[13].mxu1 }
 0x525   : > { %v1636_v3 = vadd.f32 %v1634_v1, %v1627_v60 }
 0x527   : > { %4158 = vmatpush3.msk.msra.mxu0 %vm654_vm1, %v1636_v3 }
 0x528   : > { %4160 = vmatmul.mubr.msk.f32.vlgmr.msra.gmra.mrb[10].mxu0 %vm1640_vm5, %v1637_v9  ;;  %4476 = vmatprep.subr.bf16.mxu0 %v4831_v25 }
 0x529   : > { %4478 = vmatpush3.bf16.msra.mxu0 %v5037_v23  ;;  %4183 = vmatprep.mubr.msk.f32.mxu0 %vm4829_vm0, %v4828_v0 }
 0x52a   : > { %4479 = vmatprep.subr.bf16.mxu0 %v4831_v25 }
 0x52d   : > { %4481 = vmatpush3.bf16.msra.mxu0 %v5059_v30 }
 0x52e   : > { %4482 = vmatprep.subr.bf16.mxu0 %v4831_v25 }
 0x531   : > { %4484 = vmatpush3.bf16.msra.mxu0 %v5079_v36 }
 0x532   : > { %4485 = vmatprep.subr.bf16.mxu0 %v4831_v25 }
 0x535   : > { %4487 = vmatpush3.bf16.msra.mxu0 %v5099_v42 }
 0x536   : > { %4500 = vmatprep.subr.bf16.mxu0 %v4831_v25 }
 0x5fb   : > { %v1713_v10 = vpop.f32.mrb[10].mxu0 }
 0x5fc   : > { %v4161_v23 = vpop.f32.mrb[11].mxu0  ;;  %v1718_v11 = vsel %vm1717_vm6, %v1713_v10, 0.0 }
 0x5fd   : > { %1719 = vadd.xlane.f32.xlu1 %v1718_v11 }
 0x68a   : > { %v1720_v12 = vpop.xlane.xlu1 %1719 }
 0x68b   : > { %v1721_v17 = vmul.f32 0.0078125, %v1720_v12 }
 0x68d   : > { %v1722_v18 = vsub.f32 %v1636_v3, %v1721_v17 }
 0x68f   : > { %v1723_v30 = vmul.f32 %v1722_v18, %v1722_v18 }
 0x691   : > { %4163 = vmatpush3.msk.msra.mxu1 %vm654_vm1, %v1723_v30 }
 0x692   : > { %4165 = vmatmul.mubr.msk.f32.vlgmr.msra.gmra.mrb[14].mxu1 %vm1640_vm5, %v1637_v9  ;;  %4488 = vmatprep.subr.bf16.mxu1 %v4831_v25 }
 0x693   : > { %4490 = vmatpush3.bf16.msra.mxu1 %v5044_v26  ;;  %4202 = vmatprep.mubr.msk.f32.mxu1 %vm4829_vm0, %v4828_v0 }
 0x694   : > { %4491 = vmatprep.subr.bf16.mxu1 %v4831_v25 }
 0x697   : > { %4493 = vmatpush3.bf16.msra.mxu1 %v5064_v32 }
 0x698   : > { %4494 = vmatprep.subr.bf16.mxu1 %v4831_v25 }
 0x69b   : > { %4496 = vmatpush3.bf16.msra.mxu1 %v5084_v38 }
 0x69c   : > { %4497 = vmatprep.subr.bf16.mxu1 %v4831_v25 }
 0x69f   : > { %4499 = vmatpush3.bf16.msra.mxu1 %v5104_v44 }
 0x6a0   : > { %4512 = vmatprep.subr.bf16.mxu1 %v4831_v25 }
 0x765   : > { %v1793_v36 = vpop.f32.mrb[14].mxu1 }
 0x766   : > { %v1797_v26 = vsel %vm1717_vm6, %v1793_v36, 0.0  ;;  %v4166_v42 = vpop.f32.mrb[15].mxu1 }
 0x767   : > { %1798 = vadd.xlane.f32.xlu1 %v1797_v26 }
 0x778   : > { %1812 = vperm.xlu1 %4771, %v1639_v21  }
 0x7f4   : > { %v1799_v32 = vpop.xlane.xlu1 %1798 }
 0x7f5   : > { %v1800_v22 = vmul.f32 0.0078125, %v1799_v32 }
 0x7f7   : > { %v1801_v31 = vadd.f32 1e-06, %v1800_v22 }
 0x7f8   : > { %v1813_v40 = vpop.permute.xlu1 %1812 }
 0x7f9   : > { %4779 = vrsqrt.f32 %v1801_v31 }
 0x803   : > { %v4780_v38 = vpop.eup %4779 }
 0x804   : > { %v1803_v33 = vmul.f32 %v4780_v38, %v1722_v18  ;;  %v2731_v38 = vld [vmem:[#allocation2 + $0x88] sm:$0xff] }
 0x806   : > { %v1809_v44 = vmul.f32 %v1807_v35, %v1803_v33  ;;  %v1823_v33 = vld [vmem:[%s5660_s11] sm:$0xf] }
 0x808   : > { %v1815_v43 = vadd.f32 %v1813_v40, %v1809_v44 }
 0x80a   : > { %v3739_v45 = vmul.f32 -1.442695, %v1815_v43 }
 0x80c   : > { %4781 = vpow2.f32 %v3739_v45  ;;  %v2732_v45 = vld [vmem:[#allocation2 + $0x90] sm:$0xff] }
 0x816   : > { %v4782_v49 = vpop.eup %4781 }
 0x817   : > { %v1819_v50 = vadd.f32 1.0, %v4782_v49  ;;  %v2735_v49 = vld [vmem:[#allocation2 + $0xa8] sm:$0xff] }
 0x819   : > { %4783 = vrcp.f32 %v1819_v50  ;;  %v2737_v50 = vld [vmem:[#allocation2 + $0xb8] sm:$0xff] }
 0x823   : > { %v4784_v54 = vpop.eup %4783 }
 0x824   : > { %v5488_v55 = vmul.f32 %v4784_v54, %v1815_v43  ;;  %v2730_v43 = vld [vmem:[#allocation2 + $0x80] sm:$0xff] }
 0x825   : > { %v2556_v54 = vld [vmem:[%s5662_s13] sm:$0xf] }
 0x826   : > { %4184 = vmatmul.mubr.msk.f32.vlgmr.msra.gmra.mrb[12].mxu0 %vm733_vm3, %v5488_v55  ;;  %4203 = vmatmul.mubr.msk.f32.vlgmr.msra.gmra.mrb[16].mxu1 %vm733_vm3, %v5488_v55 }
 0x827   : > { %4502 = vmatpush3.bf16.msra.mxu0 %v5123_v62  ;;  %4514 = vmatpush3.bf16.msra.mxu1 %v5125_v63  ;;  %v2640_v62 = vld [vmem:[#allocation2 + $0x8] sm:$0xff]  ;;  %v2642_v63 = vld [vmem:[#allocation2 + $0x18] sm:$0xff] }
 0x828   : > { %4503 = vmatprep.subr.bf16.mxu0 %v4831_v25  ;;  %4515 = vmatprep.subr.bf16.mxu1 %v4831_v25 }
 0x829   : > { %4221 = vmatprep.mubr.msk.f32.mxu0 %vm4829_vm0, %v4828_v0  ;;  %4240 = vmatprep.mubr.msk.f32.mxu1 %vm4829_vm0, %v4828_v0 }
 0x82b   : > { %4505 = vmatpush3.bf16.msra.mxu0 %v5147_v7  ;;  %4517 = vmatpush3.bf16.msra.mxu1 %v5149_v8  ;;  %v4590_v7 = vpack.c.bf16 %v2642_v63, %v2640_v62  ;;  %v2639_v8 = vld [vmem:[#allocation2] sm:$0xff]  ;;  %v4610_v62 = vpack.c.bf16 %v2737_v50, %v2735_v49  ;;  %v2921_v49 = vld [vmem:[#allocation2 + $0x1f8] sm:$0xff] }
 0x82c   : > { %4506 = vmatprep.subr.bf16.mxu0 %v4831_v25  ;;  %4518 = vmatprep.subr.bf16.mxu1 %v4831_v25  ;;  %v2734_v63 = vld [vmem:[#allocation2 + $0xa0] sm:$0xff] }
 0x82f   : > { %4508 = vmatpush3.bf16.msra.mxu0 %v5171_v13  ;;  %4520 = vmatpush3.bf16.msra.mxu1 %v5173_v14  ;;  %v2641_v13 = vld [vmem:[#allocation2 + $0x10] sm:$0xff] }
 0x830   : > { %4509 = vmatprep.subr.bf16.mxu0 %v4831_v25  ;;  %4521 = vmatprep.subr.bf16.mxu1 %v4831_v25  ;;  %v4592_v14 = vpack.c.bf16 %v2641_v13, %v2639_v8  ;;  %v2739_v8 = vld [vmem:[#allocation2 + $0xc8] sm:$0xff]  ;;  %v2741_v13 = vld [vmem:[#allocation2 + $0xd8] sm:$0xff] }
 0x833   : > { %4511 = vmatpush3.bf16.msra.mxu0 %v5191_v19  ;;  %4523 = vmatpush3.bf16.msra.mxu1 %v5193_v20  ;;  %v2644_v19 = vld [vmem:[#allocation2 + $0x28] sm:$0xff]  ;;  %v2646_v20 = vld [vmem:[#allocation2 + $0x38] sm:$0xff] }
 0x834   : > { %4524 = vmatprep.subr.bf16.mxu0 %v4831_v25  ;;  %4536 = vmatprep.subr.bf16.mxu1 %v4831_v25 }
 0x836   : > { %4222 = vmatmul.mubr.msk.f32.vlgmr.msra.gmra.mrb[14].mxu0 %vm733_vm3, %v5488_v55  ;;  %4241 = vmatmul.mubr.msk.f32.vlgmr.msra.gmra.mrb[18].mxu1 %vm733_vm3, %v5488_v55 }
 0x837   : > { %4526 = vmatpush3.bf16.msra.mxu0 %v5211_v28  ;;  %4538 = vmatpush3.bf16.msra.mxu1 %v5213_v29  ;;  %v4594_v28 = vpack.c.bf16 %v2646_v20, %v2644_v19  ;;  %v2643_v29 = vld [vmem:[#allocation2 + $0x20] sm:$0xff]  ;;  %v2740_v20 = vld [vmem:[#allocation2 + $0xd0] sm:$0xff] }
 0x838   : > { %4527 = vmatprep.subr.bf16.mxu0 %v4831_v25  ;;  %4539 = vmatprep.subr.bf16.mxu1 %v4831_v25  ;;  %v2738_v19 = vld [vmem:[#allocation2 + $0xc0] sm:$0xff] }
 0x839   : > { %4259 = vmatprep.mubr.msk.f32.mxu0 %vm4829_vm0, %v4828_v0  ;;  %4278 = vmatprep.mubr.msk.f32.mxu1 %vm4829_vm0, %v4828_v0 }
 0x83b   : > { %4529 = vmatpush3.bf16.msra.mxu0 %v5235_v37  ;;  %4541 = vmatpush3.bf16.msra.mxu1 %v5237_v39  ;;  %v2645_v37 = vld [vmem:[#allocation2 + $0x30] sm:$0xff] }
 0x83c   : > { %4530 = vmatprep.subr.bf16.mxu0 %v4831_v25  ;;  %4542 = vmatprep.subr.bf16.mxu1 %v4831_v25  ;;  %v4596_v39 = vpack.c.bf16 %v2645_v37, %v2643_v29  ;;  %v2745_v29 = vld [vmem:[#allocation2 + $0xf8] sm:$0xff]  ;;  %v4616_v37 = vpack.c.bf16 %v2740_v20, %v2738_v19  ;;  %v3083_v19 = vld [vmem:[#allocation2 + $0x288] sm:$0xff] }
 0x83d   : > { %v3085_v20 = vld [vmem:[#allocation2 + $0x298] sm:$0xff] }
 0x83f   : > { %4532 = vmatpush3.bf16.msra.mxu0 %v5259_v46  ;;  %4544 = vmatpush3.bf16.msra.mxu1 %v5261_v47  ;;  %v2648_v46 = vld [vmem:[#allocation2 + $0x48] sm:$0xff]  ;;  %v2650_v47 = vld [vmem:[#allocation2 + $0x58] sm:$0xff] }
 0x840   : > { %4533 = vmatprep.subr.bf16.mxu0 %v4831_v25  ;;  %4545 = vmatprep.subr.bf16.mxu1 %v4831_v25 }
 0x843   : > { %4535 = vmatpush3.bf16.msra.mxu0 %v5279_v52  ;;  %4547 = vmatpush3.bf16.msra.mxu1 %v5281_v53  ;;  %v4598_v52 = vpack.c.bf16 %v2650_v47, %v2648_v46  ;;  %v2647_v53 = vld [vmem:[#allocation2 + $0x40] sm:$0xff]  ;;  %v2744_v47 = vld [vmem:[#allocation2 + $0xf0] sm:$0xff] }
 0x844   : > { %4548 = vmatprep.subr.bf16.mxu0 %v4831_v25  ;;  %4560 = vmatprep.subr.bf16.mxu1 %v4831_v25  ;;  %v2742_v46 = vld [vmem:[#allocation2 + $0xe0] sm:$0xff] }
 0x846   : > { %4260 = vmatmul.mubr.msk.f32.vlgmr.msra.gmra.mrb[16].mxu0 %vm733_vm3, %v5488_v55  ;;  %4279 = vmatmul.mubr.msk.f32.vlgmr.msra.gmra.mrb[20].mxu1 %vm733_vm3, %v5488_v55 }
 0x847   : > { %4550 = vmatpush3.bf16.msra.mxu0 %v5299_v58  ;;  %4562 = vmatpush3.bf16.msra.mxu1 %v5301_v59  ;;  %v2649_v58 = vld [vmem:[#allocation2 + $0x50] sm:$0xff] }
 0x848   : > { %4551 = vmatprep.subr.bf16.mxu0 %v4831_v25  ;;  %4563 = vmatprep.subr.bf16.mxu1 %v4831_v25  ;;  %v4600_v59 = vpack.c.bf16 %v2649_v58, %v2647_v53  ;;  %v2819_v53 = vld [vmem:[#allocation2 + $0x108] sm:$0xff]  ;;  %v2821_v58 = vld [vmem:[#allocation2 + $0x118] sm:$0xff] }
 0x849   : > { %4297 = vmatprep.mubr.msk.f32.mxu0 %vm4829_vm0, %v4828_v0  ;;  %4316 = vmatprep.mubr.msk.f32.mxu1 %vm4829_vm0, %v4828_v0 }
 0x84b   : > { %4553 = vmatpush3.bf16.msra.mxu0 %v5323_v4  ;;  %4565 = vmatpush3.bf16.msra.mxu1 %v5325_v6  ;;  %v2652_v4 = vld [vmem:[#allocation2 + $0x68] sm:$0xff]  ;;  %v2654_v6 = vld [vmem:[#allocation2 + $0x78] sm:$0xff] }
 0x84c   : > { %4554 = vmatprep.subr.bf16.mxu0 %v4831_v25  ;;  %4566 = vmatprep.subr.bf16.mxu1 %v4831_v25 }
 0x84f   : > { %4556 = vmatpush3.bf16.msra.mxu0 %v5347_v15  ;;  %4568 = vmatpush3.bf16.msra.mxu1 %v5349_v16  ;;  %v4602_v15 = vpack.c.bf16 %v2654_v6, %v2652_v4  ;;  %v2651_v16 = vld [vmem:[#allocation2 + $0x60] sm:$0xff]  ;;  %v4622_v4 = vpack.c.bf16 %v2821_v58, %v2819_v53  ;;  %v2909_v6 = vld [vmem:[#allocation2 + $0x198] sm:$0xff]  ;;  %v3084_v53 = vld [vmem:[#allocation2 + $0x290] sm:$0xff] }
 0x850   : > { %4557 = vmatprep.subr.bf16.mxu0 %v4831_v25  ;;  %4569 = vmatprep.subr.bf16.mxu1 %v4831_v25  ;;  %v2999_v58 = vld [vmem:[#allocation2 + $0x228] sm:$0xff] }
 0x853   : > { %4559 = vmatpush3.bf16.msra.mxu0 %v5367_v24  ;;  %4571 = vmatpush3.bf16.msra.mxu1 %v5369_v27  ;;  %v2653_v24 = vld [vmem:[#allocation2 + $0x70] sm:$0xff] }
 0x854   : > { %4572 = vmatprep.subr.bf16.mxu0 %v4831_v25  ;;  %4584 = vmatprep.subr.bf16.mxu1 %v4831_v25  ;;  %v4604_v27 = vpack.c.bf16 %v2653_v24, %v2651_v16  ;;  %v2477_v16 = vpop.permute.xlu0 %2476  ;;  %v2818_v24 = vld [vmem:[#allocation2 + $0x100] sm:$0xff] }
 0x856   : > { %4298 = vmatmul.mubr.msk.f32.vlgmr.msra.gmra.mrb[18].mxu0 %vm733_vm3, %v5488_v55  ;;  %4317 = vmatmul.mubr.msk.f32.vlgmr.msra.gmra.mrb[22].mxu1 %vm733_vm3, %v5488_v55 }
 0x857   : > { %4574 = vmatpush3.bf16.msra.mxu0 %v5381_v34  ;;  %4335 = vmatprep.mubr.msk.f32.mxu0 %vm4829_vm0, %v4828_v0 }
 0x858   : > { %4575 = vmatprep.subr.bf16.mxu0 %v4831_v25  ;;  %4348 = vmatprep.mubr.msk.f32.mxu1 %vm4829_vm0, %v4828_v0 }
 0x85b   : > { %4577 = vmatpush3.bf16.msra.mxu0 %v5396_v41 }
 0x85c   : > { %4578 = vmatprep.subr.bf16.mxu0 %v4831_v25 }
 0x85f   : > { %4580 = vmatpush3.bf16.msra.mxu0 %v5410_v48 }
 0x860   : > { %4581 = vmatprep.subr.bf16.mxu0 %v4831_v25 }
 0x863   : > { %4583 = vmatpush3.bf16.msra.mxu0 %v5420_v51 }
 0x864   : > { %4591 = vmatprep.subr.bf16.mxu0 %v4590_v7  ;;  %v2736_v7 = vld [vmem:[#allocation2 + $0xb0] sm:$0xff] }
 0x866   : > { %4336 = vmatmul.mubr.msk.f32.vlgmr.msra.gmra.mrb[20].mxu0 %vm733_vm3, %v5488_v55  ;;  %v4608_v55 = vpack.c.bf16 %v2732_v45, %v2730_v43  ;;  %v2833_v43 = vld [vmem:[#allocation2 + $0x178] sm:$0xff]  ;;  %v2919_v45 = vld [vmem:[#allocation2 + $0x1e8] sm:$0xff] }
 0x867   : > { %2722 = vmatprep.mubr.f32.mxu0 %v4828_v0  ;;  %4593 = vmatpush1.bf16.msra.mxu0 %v4592_v14  ;;  %v4614_v14 = vpack.c.bf16 %v2741_v13, %v2739_v8  ;;  %v2918_v8 = vld [vmem:[#allocation2 + $0x1e0] sm:$0xff]  ;;  %v2920_v13 = vld [vmem:[#allocation2 + $0x1f0] sm:$0xff] }
 0x868   : > { %4595 = vmatprep.subr.bf16.mxu0 %v4594_v28  ;;  %v2743_v28 = vld [vmem:[#allocation2 + $0xe8] sm:$0xff] }
 0x86b   : > { %4597 = vmatpush1.bf16.msra.mxu0 %v4596_v39  ;;  %v4618_v39 = vpack.c.bf16 %v2745_v29, %v2743_v28  ;;  %v4652_v29 = vpack.c.bf16 %v2920_v13, %v2918_v8  ;;  %v3175_v8 = vld [vmem:[#allocation2 + $0x328] sm:$0xff]  ;;  %v3177_v13 = vld [vmem:[#allocation2 + $0x338] sm:$0xff] }
 0x86c   : > { %4599 = vmatprep.subr.bf16.mxu0 %v4598_v52  ;;  %v4620_v52 = vpack.c.bf16 %v2744_v47, %v2742_v46  ;;  %v4670_v47 = vpack.c.bf16 %v3085_v20, %v3083_v19 }
 0x86f   : > { %4601 = vmatpush1.bf16.msra.mxu0 %v4600_v59  ;;  %v2907_v59 = vld [vmem:[#allocation2 + $0x188] sm:$0xff] }
 0x870   : > { %4603 = vmatprep.subr.bf16.mxu0 %v4602_v15  ;;  %v4638_v15 = vpack.c.bf16 %v2909_v6, %v2907_v59  ;;  %v3001_v59 = vld [vmem:[#allocation2 + $0x238] sm:$0xff] }
 0x871   : > { %v3089_v6 = vld [vmem:[#allocation2 + $0x2b8] sm:$0xff] }
 0x873   : > { %4605 = vmatpush1.bf16.msra.mxu0 %v4604_v27  ;;  %v2820_v27 = vld [vmem:[#allocation2 + $0x110] sm:$0xff] }
 0x874   : > { %4623 = vmatprep.subr.bf16.mxu0 %v4622_v4  ;;  %v3087_v4 = vld [vmem:[#allocation2 + $0x2a8] sm:$0xff] }
 0x8f9   : > { %v1894_v34 = vpop.f32.mrb[12].mxu0  ;;  %v1964_v41 = vpop.f32.mrb[16].mxu1 }
 0x8fa   : > { %v2459_v48 = vrot.slane %v1964_v41, 4  ;;  %v4185_v51 = vpop.f32.mrb[13].mxu0  ;;  %v4204_v56 = vpop.f32.mrb[17].mxu1  ;;  %v2908_v41 = vld [vmem:[#allocation2 + $0x190] sm:$0xff] }
 0x8fb   : > { %v2561_v51 = vpop.permute.xlu0 %2560  ;;  %v2825_v56 = vld [vmem:[#allocation2 + $0x138] sm:$0xff] }
 0x8fc   : > { %v2470_v2 = vsel %vm654_vm1, %v1894_v34, %v2459_v48  ;;  %v2906_v34 = vld [vmem:[#allocation2 + $0x180] sm:$0xff]  ;;  %v2823_v48 = vld [vmem:[#allocation2 + $0x128] sm:$0xff] }
 0x909   : > { %v2034_v57 = vpop.f32.mrb[14].mxu0  ;;  %v2104_v60 = vpop.f32.mrb[18].mxu1 }
 0x90a   : > { %v2462_v61 = vrot.slane %v2104_v60, 4  ;;  %v4223_v1 = vpop.f32.mrb[15].mxu0  ;;  %v4242_v3 = vpop.f32.mrb[19].mxu1  ;;  %v4742_v60 = vadd.f32 %v2561_v51, %v2477_v16  ;;  %v3088_v51 = vld [vmem:[#allocation2 + $0x2b0] sm:$0xff] }
 0x90b   : > { %v4624_v1 = vpack.c.bf16 %v2820_v27, %v2818_v24  ;;  %v4640_v3 = vpack.c.bf16 %v2908_v41, %v2906_v34  ;;  %v2998_v24 = vld [vmem:[#allocation2 + $0x220] sm:$0xff]  ;;  %v3000_v27 = vld [vmem:[#allocation2 + $0x230] sm:$0xff]  ;;  %v4658_v34 = vpack.c.bf16 %v3001_v59, %v2999_v58  ;;  %v4674_v41 = vpack.c.bf16 %v3089_v6, %v3087_v4  ;;  %v3267_v58 = vld [vmem:[#allocation2 + $0x3c8] sm:$0xff] }
 0x90c   : > { %v2471_v9 = vsel %vm654_vm1, %v2034_v57, %v2462_v61  ;;  %v2913_v57 = vld [vmem:[#allocation2 + $0x1b8] sm:$0xff] }
 0x90d   : > { %v4585_v10 = vpack.c.bf16 %v2471_v9, %v2470_v2  ;;  %v2911_v2 = vld [vmem:[#allocation2 + $0x1a8] sm:$0xff]  ;;  %v2822_v9 = vld [vmem:[#allocation2 + $0x120] sm:$0xff]  ;;  %v3269_v59 = vld [vmem:[#allocation2 + $0x3d8] sm:$0xff] }
 0x90f   : > { %4586 = vmatpush3.bf16.msra.mxu1 %v4585_v10  ;;  %v2824_v10 = vld [vmem:[#allocation2 + $0x130] sm:$0xff] }
 0x910   : > { %4587 = vmatprep.subr.bf16.mxu1 %v4831_v25  ;;  %v2733_v25 = vld [vmem:[#allocation2 + $0x98] sm:$0xff] }
 0x911   : > { %v4606_v44 = vpack.c.bf16 %v2733_v25, %v2731_v38  ;;  %v2828_v38 = vld [vmem:[#allocation2 + $0x150] sm:$0xff] }
 0x919   : > { %v2174_v23 = vpop.f32.mrb[16].mxu0  ;;  %v2244_v11 = vpop.f32.mrb[20].mxu1 }
 0x91a   : > { %v2465_v12 = vrot.slane %v2244_v11, 4  ;;  %v4261_v17 = vpop.f32.mrb[17].mxu0  ;;  %v4280_v18 = vpop.f32.mrb[21].mxu1 }
 0x91b   : > { %v4642_v17 = vpack.c.bf16 %v2913_v57, %v2911_v2  ;;  %v2910_v18 = vld [vmem:[#allocation2 + $0x1a0] sm:$0xff]  ;;  %v3005_v2 = vld [vmem:[#allocation2 + $0x258] sm:$0xff]  ;;  %v3091_v57 = vld [vmem:[#allocation2 + $0x2c8] sm:$0xff] }
 0x91c   : > { %v2472_v30 = vsel %vm654_vm1, %v2174_v23, %v2465_v12  ;;  %v4626_v12 = vpack.c.bf16 %v2825_v56, %v2823_v48  ;;  %v3086_v48 = vld [vmem:[#allocation2 + $0x2a0] sm:$0xff]  ;;  %v3003_v56 = vld [vmem:[#allocation2 + $0x248] sm:$0xff] }
 0x929   : > { %v2314_v36 = vpop.f32.mrb[18].mxu0  ;;  %v2384_v26 = vpop.f32.mrb[22].mxu1 }
 0x92a   : > { %v2468_v42 = vrot.slane %v2384_v26, 4  ;;  %v4299_v21 = vpop.f32.mrb[19].mxu0  ;;  %v4318_v32 = vpop.f32.mrb[23].mxu1  ;;  %v2829_v26 = vld [vmem:[#allocation2 + $0x158] sm:$0xff] }
 0x92b   : > { %v2917_v21 = vld [vmem:[#allocation2 + $0x1d8] sm:$0xff]  ;;  %v4628_v32 = vpack.c.bf16 %v2824_v10, %v2822_v9  ;;  %v3004_v9 = vld [vmem:[#allocation2 + $0x250] sm:$0xff]  ;;  %v4662_v10 = vpack.c.bf16 %v3005_v2, %v3003_v56  ;;  %v3271_v56 = vld [vmem:[#allocation2 + $0x3e8] sm:$0xff] }
 0x92c   : > { %v2473_v22 = vsel %vm654_vm1, %v2314_v36, %v2468_v42  ;;  %v2827_v36 = vld [vmem:[#allocation2 + $0x148] sm:$0xff]  ;;  %v3273_v2 = vld [vmem:[#allocation2 + $0x3f8] sm:$0xff] }
 0x92d   : > { %v4588_v31 = vpack.c.bf16 %v2473_v22, %v2472_v30  ;;  %v2912_v30 = vld [vmem:[#allocation2 + $0x1b0] sm:$0xff]  ;;  %v2915_v42 = vld [vmem:[#allocation2 + $0x1c8] sm:$0xff]  ;;  %v4630_v25 = vpack.c.bf16 %v2829_v26, %v2827_v36  ;;  %v3097_v26 = vld [vmem:[#allocation2 + $0x2f8] sm:$0xff] }
 0x92e   : > { %v4644_v22 = vpack.c.bf16 %v2912_v30, %v2910_v18  ;;  %v3007_v18 = vld [vmem:[#allocation2 + $0x268] sm:$0xff]  ;;  %v3009_v30 = vld [vmem:[#allocation2 + $0x278] sm:$0xff] }
 0x92f   : > { %4589 = vmatpush3.bf16.msra.mxu1 %v4588_v31  ;;  %v2826_v31 = vld [vmem:[#allocation2 + $0x140] sm:$0xff]  ;;  %v3095_v36 = vld [vmem:[#allocation2 + $0x2e8] sm:$0xff] }
 0x930   : > { %4346 = vmatprep.subr.mxu1 %v4828_v0  ;;  %v4632_v50 = vpack.c.bf16 %v2828_v38, %v2826_v31  ;;  %v4666_v31 = vpack.c.bf16 %v3009_v30, %v3007_v18  ;;  %v4682_v38 = vpack.c.bf16 %v3097_v26, %v3095_v36  ;;  %v3346_v26 = vld [vmem:[#allocation2 + $0x400] sm:$0xff] }
 0x939   : > { %v2454_v35 = vpop.f32.mrb[20].mxu0 }
 0x93a   : > { %v4337_v40 = vpop.f32.mrb[21].mxu0  ;;  %4347 = vmatpush3.msk.msra.mxu1 %vm654_vm1, %v2454_v35  ;;  %v2914_v35 = vld [vmem:[#allocation2 + $0x1c0] sm:$0xff] }
 0x93b   : > { %4349 = vmatmul.mubr.msk.f32.vlgmr.msra.gmra.mrb[24].mxu1 %vm2479_vm7, %v1823_v33  ;;  %4351 = vmatprep.subr.mxu1 %v4828_v0  ;;  %v4646_v33 = vpack.c.bf16 %v2917_v21, %v2915_v42  ;;  %v2831_v40 = vld [vmem:[#allocation2 + $0x168] sm:$0xff] }
 0x93c   : > { %4352 = vmatpush3.msra.mxu1 %v5001_v5  ;;  %4353 = vmatprep.mubr.msk.f32.mxu1 %vm4829_vm0, %v4828_v0  ;;  %v4612_v5 = vpack.c.bf16 %v2736_v7, %v2734_v63  ;;  %v4634_v63 = vpack.c.bf16 %v2833_v43, %v2831_v40  ;;  %v4650_v7 = vpack.c.bf16 %v2921_v49, %v2919_v45  ;;  %v3259_v40 = vld [vmem:[#allocation2 + $0x388] sm:$0xff]  ;;  %v3261_v43 = vld [vmem:[#allocation2 + $0x398] sm:$0xff] }
 0x93d   : > { %4607 = vmatprep.subr.bf16.mxu1 %v4606_v44  ;;  %v2916_v44 = vld [vmem:[#allocation2 + $0x1d0] sm:$0xff] }
 0x943   : > { %4354 = vmatmul.mubr.msk.f32.vlgmr.msra.gmra.mrb[24].mxu1 %vm659_vm2, %v2556_v54  ;;  %v4648_v54 = vpack.c.bf16 %v2916_v44, %v2914_v35  ;;  %v3171_v35 = vld [vmem:[#allocation2 + $0x308] sm:$0xff]  ;;  %v3173_v44 = vld [vmem:[#allocation2 + $0x318] sm:$0xff] }
 0x944   : > { %4609 = vmatpush1.bf16.msra.mxu1 %v4608_v55  ;;  %2810 = vmatprep.mubr.f32.mxu1 %v4828_v0  ;;  %v2830_v55 = vld [vmem:[#allocation2 + $0x160] sm:$0xff] }
 0x945   : > { %4611 = vmatprep.subr.bf16.mxu1 %v4610_v62  ;;  %v2832_v62 = vld [vmem:[#allocation2 + $0x170] sm:$0xff] }
 0x946   : > { %v4636_v28 = vpack.c.bf16 %v2832_v62, %v2830_v55  ;;  %v4686_v55 = vpack.c.bf16 %v3173_v44, %v3171_v35  ;;  %v4702_v62 = vpack.c.bf16 %v3261_v43, %v3259_v40  ;;  %v3357_v35 = vld [vmem:[#allocation2 + $0x458] sm:$0xff]  ;;  %v3354_v43 = vld [vmem:[#allocation2 + $0x440] sm:$0xff] }
 0x948   : > { %4613 = vmatpush1.bf16.msra.mxu1 %v4612_v5  ;;  %v2995_v5 = vld [vmem:[#allocation2 + $0x208] sm:$0xff] }
 0x949   : > { %4615 = vmatprep.subr.bf16.mxu1 %v4614_v14  ;;  %v2997_v14 = vld [vmem:[#allocation2 + $0x218] sm:$0xff] }
 0x94a   : > { %v4654_v46 = vpack.c.bf16 %v2997_v14, %v2995_v5  ;;  %v3263_v5 = vld [vmem:[#allocation2 + $0x3a8] sm:$0xff]  ;;  %v3265_v14 = vld [vmem:[#allocation2 + $0x3b8] sm:$0xff] }
 0x94c   : > { %4617 = vmatpush1.bf16.msra.mxu1 %v4616_v37  ;;  %v2994_v37 = vld [vmem:[#allocation2 + $0x200] sm:$0xff] }
 0x94d   : > { %4619 = vmatprep.subr.bf16.mxu1 %v4618_v39  ;;  %v2996_v39 = vld [vmem:[#allocation2 + $0x210] sm:$0xff] }
 0x950   : > { %4621 = vmatpush1.bf16.msra.mxu1 %v4620_v52  ;;  %v3082_v52 = vld [vmem:[#allocation2 + $0x280] sm:$0xff] }
 0x951   : > { %4639 = vmatprep.subr.bf16.mxu1 %v4638_v15  ;;  %v4656_v15 = vpack.c.bf16 %v2996_v39, %v2994_v37  ;;  %v4672_v16 = vpack.c.bf16 %v3084_v53, %v3082_v52  ;;  %v4690_v37 = vpack.c.bf16 %v3177_v13, %v3175_v8  ;;  %v4706_v39 = vpack.c.bf16 %v3265_v14, %v3263_v5  ;;  %v3179_v52 = vld [vmem:[#allocation2 + $0x348] sm:$0xff]  ;;  %v3181_v53 = vld [vmem:[#allocation2 + $0x358] sm:$0xff] }
 0xa16   : > { %v2632_v61 = vpop.f32.mrb[24].mxu1 }
 0xa17   : > { %v5600_v23 = vadd.f32 %v4742_v60, %v2632_v61  ;;  %v4355_v11 = vpop.f32.mrb[25].mxu1  ;;  %v3093_v60 = vld [vmem:[#allocation2 + $0x2d8] sm:$0xff]  ;;  %v4660_v61 = vpack.c.bf16 %v3000_v27, %v2998_v24  ;;  %v4694_v24 = vpack.c.bf16 %v3181_v53, %v3179_v52  ;;  %v4710_v27 = vpack.c.bf16 %v3269_v59, %v3267_v58 }
 0xa18   : > { %v4678_v11 = vpack.c.bf16 %v3093_v60, %v3091_v57 }
 0xa19   : > { %3752 = vmatmul.mubr.msk.f32.vlgmr.msra.gmra.mrb[22].mxu0 %vm733_vm3, %v5600_v23  ;;  %3753 = vmatmul.mubr.msk.f32.vlgmr.msra.gmra.mrb[26].mxu1 %vm733_vm3, %v5600_v23 }
 0xa1a   : > { %4625 = vmatpush1.bf16.msra.mxu0 %v4624_v1  ;;  %4641 = vmatpush1.bf16.msra.mxu1 %v4640_v3  ;;  %v4676_v1 = vpack.c.bf16 %v3088_v51, %v3086_v48  ;;  %v3002_v3 = vld [vmem:[#allocation2 + $0x240] sm:$0xff]  ;;  %v3183_v48 = vld [vmem:[#allocation2 + $0x368] sm:$0xff]  ;;  %v3185_v51 = vld [vmem:[#allocation2 + $0x378] sm:$0xff] }
 0xa1b   : > { %4627 = vmatprep.subr.bf16.mxu0 %v4626_v12  ;;  %4643 = vmatprep.subr.bf16.mxu1 %v4642_v17  ;;  %v3090_v12 = vld [vmem:[#allocation2 + $0x2c0] sm:$0xff]  ;;  %v3092_v17 = vld [vmem:[#allocation2 + $0x2d0] sm:$0xff]  ;;  %v4664_v42 = vpack.c.bf16 %v3004_v9, %v3002_v3  ;;  %v4714_v3 = vpack.c.bf16 %v3273_v2, %v3271_v56 }
 0xa1c   : > { %2898 = vmatprep.mubr.f32.mxu0 %v4828_v0  ;;  %2986 = vmatprep.mubr.f32.mxu1 %v4828_v0  ;;  %v4680_v21 = vpack.c.bf16 %v3092_v17, %v3090_v12  ;;  %v3184_v9 = vld [vmem:[#allocation2 + $0x370] sm:$0xff]  ;;  %v3347_v12 = vld [vmem:[#allocation2 + $0x408] sm:$0xff]  ;;  %v3349_v17 = vld [vmem:[#allocation2 + $0x418] sm:$0xff] }
 0xa1d   : > { %v4718_v36 = vpack.c.bf16 %v3349_v17, %v3347_v12  ;;  %v2637_v12 = vld [vmem:[%s5664_s15] sm:$0xf]  ;;  %v3468_v17 = vpop.permute.xlu0 %3467 }
 0xa1e   : > { %4629 = vmatpush1.bf16.msra.mxu0 %v4628_v32  ;;  %4645 = vmatpush1.bf16.msra.mxu1 %v4644_v22  ;;  %v3006_v32 = vld [vmem:[#allocation2 + $0x260] sm:$0xff]  ;;  %v3008_v22 = vld [vmem:[#allocation2 + $0x270] sm:$0xff] }
 0xa1f   : > { %4631 = vmatprep.subr.bf16.mxu0 %v4630_v25  ;;  %4647 = vmatprep.subr.bf16.mxu1 %v4646_v33  ;;  %v3094_v25 = vld [vmem:[#allocation2 + $0x2e0] sm:$0xff]  ;;  %v3096_v33 = vld [vmem:[#allocation2 + $0x2f0] sm:$0xff]  ;;  %v4668_v45 = vpack.c.bf16 %v3008_v22, %v3006_v32  ;;  %v3353_v32 = vld [vmem:[#allocation2 + $0x438] sm:$0xff] }
 0xa20   : > { %v4684_v49 = vpack.c.bf16 %v3096_v33, %v3094_v25  ;;  %v3352_v25 = vld [vmem:[#allocation2 + $0x430] sm:$0xff]  ;;  %v3355_v33 = vld [vmem:[#allocation2 + $0x448] sm:$0xff] }
 0xa21   : > { %v4726_v40 = vpack.c.bf16 %v3357_v35, %v3355_v33 }
 0xa22   : > { %4633 = vmatpush1.bf16.msra.mxu0 %v4632_v50  ;;  %4649 = vmatpush1.bf16.msra.mxu1 %v4648_v54  ;;  %v3170_v50 = vld [vmem:[#allocation2 + $0x300] sm:$0xff]  ;;  %v3172_v54 = vld [vmem:[#allocation2 + $0x310] sm:$0xff] }
 0xa23   : > { %4635 = vmatprep.subr.bf16.mxu0 %v4634_v63  ;;  %4651 = vmatprep.subr.bf16.mxu1 %v4650_v7  ;;  %v3258_v63 = vld [vmem:[#allocation2 + $0x380] sm:$0xff]  ;;  %v3260_v7 = vld [vmem:[#allocation2 + $0x390] sm:$0xff]  ;;  %v4688_v19 = vpack.c.bf16 %v3172_v54, %v3170_v50  ;;  %v3361_v50 = vld [vmem:[#allocation2 + $0x478] sm:$0xff] }
 0xa24   : > { %v4704_v20 = vpack.c.bf16 %v3260_v7, %v3258_v63  ;;  %v3360_v63 = vld [vmem:[#allocation2 + $0x470] sm:$0xff] }
 0xa26   : > { %4637 = vmatpush1.bf16.msra.mxu0 %v4636_v28  ;;  %4653 = vmatpush1.bf16.msra.mxu1 %v4652_v29  ;;  %v3174_v28 = vld [vmem:[#allocation2 + $0x320] sm:$0xff]  ;;  %v3176_v29 = vld [vmem:[#allocation2 + $0x330] sm:$0xff] }
 0xa27   : > { %4655 = vmatprep.subr.bf16.mxu0 %v4654_v46  ;;  %4671 = vmatprep.subr.bf16.mxu1 %v4670_v47  ;;  %v3262_v46 = vld [vmem:[#allocation2 + $0x3a0] sm:$0xff]  ;;  %v3264_v47 = vld [vmem:[#allocation2 + $0x3b0] sm:$0xff]  ;;  %v4692_v4 = vpack.c.bf16 %v3176_v29, %v3174_v28 }
 0xa28   : > { %v4708_v6 = vpack.c.bf16 %v3264_v47, %v3262_v46 }
 0xa29   : > { %3754 = vmatmul.mubr.msk.f32.vlgmr.msra.gmra.mrb[24].mxu0 %vm733_vm3, %v5600_v23  ;;  %3755 = vmatmul.mubr.msk.f32.vlgmr.msra.gmra.mrb[28].mxu1 %vm733_vm3, %v5600_v23 }
 0xa2a   : > { %4657 = vmatpush1.bf16.msra.mxu0 %v4656_v15  ;;  %4673 = vmatpush1.bf16.msra.mxu1 %v4672_v16  ;;  %v3178_v15 = vld [vmem:[#allocation2 + $0x340] sm:$0xff]  ;;  %v3180_v16 = vld [vmem:[#allocation2 + $0x350] sm:$0xff] }
 0xa2b   : > { %4659 = vmatprep.subr.bf16.mxu0 %v4658_v34  ;;  %4675 = vmatprep.subr.bf16.mxu1 %v4674_v41  ;;  %v3266_v34 = vld [vmem:[#allocation2 + $0x3c0] sm:$0xff]  ;;  %v3268_v41 = vld [vmem:[#allocation2 + $0x3d0] sm:$0xff]  ;;  %v4696_v57 = vpack.c.bf16 %v3180_v16, %v3178_v15 }
 0xa2c   : > { %3074 = vmatprep.mubr.f32.mxu0 %v4828_v0  ;;  %3162 = vmatprep.mubr.f32.mxu1 %v4828_v0  ;;  %v4712_v60 = vpack.c.bf16 %v3268_v41, %v3266_v34 }
 0xa2e   : > { %4661 = vmatpush1.bf16.msra.mxu0 %v4660_v61  ;;  %4677 = vmatpush1.bf16.msra.mxu1 %v4676_v1  ;;  %v3182_v61 = vld [vmem:[#allocation2 + $0x360] sm:$0xff]  ;;  %v4698_v1 = vpack.c.bf16 %v3185_v51, %v3183_v48 }
 0xa2f   : > { %4663 = vmatprep.subr.bf16.mxu0 %v4662_v10  ;;  %4679 = vmatprep.subr.bf16.mxu1 %v4678_v11  ;;  %v3270_v10 = vld [vmem:[#allocation2 + $0x3e0] sm:$0xff]  ;;  %v3272_v11 = vld [vmem:[#allocation2 + $0x3f0] sm:$0xff]  ;;  %v4700_v18 = vpack.c.bf16 %v3184_v9, %v3182_v61 }
 0xa30   : > { %v4716_v30 = vpack.c.bf16 %v3272_v11, %v3270_v10 }
 0xa32   : > { %4665 = vmatpush1.bf16.msra.mxu0 %v4664_v42  ;;  %4681 = vmatpush1.bf16.msra.mxu1 %v4680_v21  ;;  %v3348_v42 = vld [vmem:[#allocation2 + $0x410] sm:$0xff]  ;;  %v3351_v21 = vld [vmem:[#allocation2 + $0x428] sm:$0xff] }
 0xa33   : > { %4667 = vmatprep.subr.bf16.mxu0 %v4666_v31  ;;  %4683 = vmatprep.subr.bf16.mxu1 %v4682_v38  ;;  %v4720_v22 = vpack.c.bf16 %v3348_v42, %v3346_v26  ;;  %v4722_v31 = vpack.c.bf16 %v3353_v32, %v3351_v21  ;;  %v3350_v38 = vld [vmem:[#allocation2 + $0x420] sm:$0xff] }
 0xa34   : > { %v4724_v44 = vpack.c.bf16 %v3352_v25, %v3350_v38 }
 0xa36   : > { %4669 = vmatpush1.bf16.msra.mxu0 %v4668_v45  ;;  %4685 = vmatpush1.bf16.msra.mxu1 %v4684_v49  ;;  %v3356_v45 = vld [vmem:[#allocation2 + $0x450] sm:$0xff]  ;;  %v3359_v49 = vld [vmem:[#allocation2 + $0x468] sm:$0xff] }
 0xa37   : > { %4687 = vmatprep.subr.bf16.mxu0 %v4686_v55  ;;  %4703 = vmatprep.subr.bf16.mxu1 %v4702_v62  ;;  %v4728_v54 = vpack.c.bf16 %v3356_v45, %v3354_v43  ;;  %v4730_v55 = vpack.c.bf16 %v3361_v50, %v3359_v49  ;;  %v3358_v62 = vld [vmem:[#allocation2 + $0x460] sm:$0xff] }
 0xa38   : > { %v4732_v7 = vpack.c.bf16 %v3360_v63, %v3358_v62 }
 0xa39   : > { %3756 = vmatmul.mubr.msk.f32.vlgmr.msra.gmra.mrb[26].mxu0 %vm733_vm3, %v5600_v23  ;;  %3757 = vmatmul.mubr.msk.f32.vlgmr.msra.gmra.mrb[30].mxu1 %vm733_vm3, %v5600_v23 }
 0xa3a   : > { %4689 = vmatpush1.bf16.msra.mxu0 %v4688_v19  ;;  %4705 = vmatpush1.bf16.msra.mxu1 %v4704_v20 }
 0xa3b   : > { %4691 = vmatprep.subr.bf16.mxu0 %v4690_v37  ;;  %4707 = vmatprep.subr.bf16.mxu1 %v4706_v39 }
 0xa3c   : > { %3250 = vmatprep.mubr.f32.mxu0 %v4828_v0  ;;  %3338 = vmatprep.mubr.f32.mxu1 %v4828_v0 }
 0xa3e   : > { %4693 = vmatpush1.bf16.msra.mxu0 %v4692_v4  ;;  %4709 = vmatpush1.bf16.msra.mxu1 %v4708_v6 }
 0xa3f   : > { %4695 = vmatprep.subr.bf16.mxu0 %v4694_v24  ;;  %4711 = vmatprep.subr.bf16.mxu1 %v4710_v27 }
 0xa42   : > { %4697 = vmatpush1.bf16.msra.mxu0 %v4696_v57  ;;  %4713 = vmatpush1.bf16.msra.mxu1 %v4712_v60 }
 0xa43   : > { %4699 = vmatprep.subr.bf16.mxu0 %v4698_v1  ;;  %4715 = vmatprep.subr.bf16.mxu1 %v4714_v3 }
 0xa46   : > { %4701 = vmatpush1.bf16.msra.mxu0 %v4700_v18  ;;  %4717 = vmatpush1.bf16.msra.mxu1 %v4716_v30 }
 0xa47   : > { %4719 = vmatprep.subr.bf16.mxu0 %v4718_v36 }
 0xa49   : > { %3758 = vmatmul.mubr.msk.f32.vlgmr.msra.gmra.mrb[28].mxu0 %vm733_vm3, %v5600_v23  ;;  %3759 = vmatmul.mubr.msk.f32.vlgmr.msra.gmra.mrb[32].mxu1 %vm733_vm3, %v5600_v23 }
 0xa4a   : > { %4721 = vmatpush1.bf16.msra.mxu0 %v4720_v22  ;;  %3426 = vmatprep.mubr.f32.mxu0 %v4828_v0 }
 0xa4b   : > { %4723 = vmatprep.subr.bf16.mxu0 %v4722_v31  ;;  %3543 = vmatprep.mubr.f32.mxu1 %v4828_v0 }
 0xa4e   : > { %4725 = vmatpush1.bf16.msra.mxu0 %v4724_v44 }
 0xa4f   : > { %4727 = vmatprep.subr.bf16.mxu0 %v4726_v40 }
 0xa52   : > { %4729 = vmatpush1.bf16.msra.mxu0 %v4728_v54 }
 0xa53   : > { %4731 = vmatprep.subr.bf16.mxu0 %v4730_v55 }
 0xa56   : > { %4733 = vmatpush1.bf16.msra.mxu0 %v4732_v7 }
 0xa59   : > { %3760 = vmatmul.mubr.msk.f32.vlgmr.msra.gmra.mrb[30].mxu0 %vm733_vm3, %v5600_v23 }
 0xaec   : > { %v2724_v8 = vpop.f32.mrb[22].mxu0  ;;  %v2812_v13 = vpop.f32.mrb[26].mxu1 }
 0xaed   : > { %v3435_v5 = vrot.slane %v2812_v13, 4  ;;  %v2726_v14 = vpop.f32.mrb[23].mxu0  ;;  %v2814_v0 = vpop.f32.mrb[27].mxu1 }
 0xaee   : > { %v3436_v19 = vrot.slane %v2814_v0, 4 }
 0xaef   : > { %v3457_v20 = vsel %vm654_vm1, %v2724_v8, %v3435_v5 }
 0xaf0   : > { %v3458_v28 = vsel %vm654_vm1, %v2726_v14, %v3436_v19 }
 0xafc   : > { %v2900_v29 = vpop.f32.mrb[24].mxu0  ;;  %v2988_v37 = vpop.f32.mrb[28].mxu1 }
 0xafd   : > { %v3441_v39 = vrot.slane %v2988_v37, 4  ;;  %v2902_v46 = vpop.f32.mrb[25].mxu0  ;;  %v2990_v47 = vpop.f32.mrb[29].mxu1 }
 0xafe   : > { %v3442_v52 = vrot.slane %v2990_v47, 4 }
 0xaff   : > { %v3459_v53 = vsel %vm654_vm1, %v2900_v29, %v3441_v39 }
 0xb00   : > { %v4736_v58 = vpack.c.bf16 %v3459_v53, %v3457_v20  ;;  %v3460_v23 = vsel %vm654_vm1, %v2902_v46, %v3442_v52 }
 0xb01   : > { %v4734_v59 = vpack.c.bf16 %v3460_v23, %v3458_v28 }
 0xb03   : > { %4735 = vmatprep.subr.bf16.mxu1 %v4734_v59 }
 0xb04   : > { %4737 = vmatpush1.bf16.msra.mxu1 %v4736_v58 }
 0xb0c   : > { %v3076_v4 = vpop.f32.mrb[26].mxu0  ;;  %v3164_v6 = vpop.f32.mrb[30].mxu1 }
 0xb0d   : > { %v3447_v15 = vrot.slane %v3164_v6, 4  ;;  %v3078_v16 = vpop.f32.mrb[27].mxu0  ;;  %v3166_v24 = vpop.f32.mrb[31].mxu1 }
 0xb0e   : > { %v3448_v27 = vrot.slane %v3166_v24, 4 }
 0xb0f   : > { %v3461_v34 = vsel %vm654_vm1, %v3076_v4, %v3447_v15 }
 0xb10   : > { %v3462_v41 = vsel %vm654_vm1, %v3078_v16, %v3448_v27 }
 0xb1c   : > { %v3252_v48 = vpop.f32.mrb[28].mxu0  ;;  %v3340_v51 = vpop.f32.mrb[32].mxu1 }
 0xb1d   : > { %v3453_v56 = vrot.slane %v3340_v51, 4  ;;  %v3254_v2 = vpop.f32.mrb[29].mxu0  ;;  %v3342_v57 = vpop.f32.mrb[33].mxu1 }
 0xb1e   : > { %v3454_v60 = vrot.slane %v3342_v57, 4 }
 0xb1f   : > { %v3463_v61 = vsel %vm654_vm1, %v3252_v48, %v3453_v56 }
 0xb20   : > { %v4740_v1 = vpack.c.bf16 %v3463_v61, %v3461_v34  ;;  %v3464_v3 = vsel %vm654_vm1, %v3254_v2, %v3454_v60 }
 0xb21   : > { %v4738_v9 = vpack.c.bf16 %v3464_v3, %v3462_v41 }
 0xb23   : > { %4739 = vmatprep.subr.bf16.mxu1 %v4738_v9 }
 0xb24   : > { %4741 = vmatpush1.bf16.msra.mxu1 %v4740_v1 }
 0xb2c   : > { %v3428_v10 = vpop.f32.mrb[30].mxu0 }
 0xb2d   : > { %v3430_v11 = vpop.f32.mrb[31].mxu0 }
 0xb2e   : > { %3761 = vmatprep.subr.msk.mxu1 %vm654_vm1, %v3430_v11 }
 0xb2f   : > { %3762 = vmatpush1.msk.msra.mxu1 %vm654_vm1, %v3428_v10 }
 0xb30   : > { %3763 = vmatmul.mubr.msk.f32.vlgmr.msra.gmra.mrb[34].mxu1 %vm2479_vm7, %v2637_v12 }
 0xc03   : > { %v3545_v18 = vpop.f32.mrb[34].mxu1 }
 0xc04   : > { %v3546_v30 = vadd.f32 %v3545_v18, %v3468_v17  ;;  %v3547_v36 = vpop.f32.mrb[35].mxu1 }
 0xc05   : > { %v3548_v26 = vadd.f32 %v3547_v36, %v3468_v17 }
 0xc07   : > { %v3552_v42 = vcombine.low %v3546_v30, %v3548_v26 }
 0xc09   : > { %3554 = vst [vmem:[%s648_s28] sm:$0xff] %v3552_v42 }
 0xc0a PF: > { %s30_s0 = sadd.s32 1, %s4823_s0  }
 0xc0b   : > { %p27_p3 = scmp.ge.s32.totalorder %s30_s0, 4  }
 0xc0d   :  { %29 = sbr.rel (!%p27_p3) target bundleno = 6 (0x6), region = 153 }
 0xc14   :  { %3576 = vsyncpa [#allocation3], 1 }
 0xc15   :  { %3578 = vsyncpa [#allocation3 + $0x1], 1 }

</bundles_post_ra>
